<compile_context>
chip_gen: v7x
topology: tpu7x:2x2x1
jax: 0.10.0
libtpu: 0.0.40
codegen_flags: <defaults>
</compile_context>

<pallas_src>
import functools

import jax
import jax.numpy as jnp
from jax.experimental import pallas as pl
from jax.experimental.pallas import tpu as pltpu


# ----------------------------- activations -----------------------------

_ACT2FN = {
    "silu": lambda x: x * jax.nn.sigmoid(x),
    "gelu": jax.nn.gelu,
    "relu": lambda x: jnp.maximum(x, 0.0),
}


# ----------------------------- chip-aware config -----------------------------

def _chip_config():
    """Pick VMEM budget and preferred tile sizes per TPU generation."""
    vmem_bytes = None
    try:
        info = pltpu.get_tpu_info()
        vmem_bytes = getattr(info, "vmem_capacity_bytes", None)
    except Exception:
        vmem_bytes = None
    if vmem_bytes is None:
        vmem_bytes = 64 * 1024 * 1024  # conservative: assume v7x-sized VMEM

    if vmem_bytes >= 100 * 1024 * 1024:
        # v5e / v6e: 128 MiB physical VMEM -> large tiles, ~100 MiB scoped limit.
        return {"vmem_limit": 100 * 1024 * 1024, "tm": 512, "tn": 2048, "tk": 2048}
    # v7x: 64 MiB physical VMEM -> leave headroom for compiler scratch.
    return {"vmem_limit": 48 * 1024 * 1024, "tm": 512, "tn": 1024, "tk": 2048}


_CFG = _chip_config()


def _compiler_params():
    return pltpu.CompilerParams(
        dimension_semantics=("parallel", "parallel", "arbitrary"),
        vmem_limit_bytes=_CFG["vmem_limit"],
    )


# ----------------------------- tiling helpers -----------------------------

def _tile(dim, pref):
    """Largest lane-aligned (multiple of 128) tile <= pref dividing dim.

    Falls back to the full dim for small / non-128-multiple sizes (full-extent
    blocks are always legal for the (8,128) constraint).
    """
    if dim <= pref or dim % 128 != 0:
        return dim
    t = max((pref // 128) * 128, 128)
    while dim % t:
        t -= 128
    return t


def _select_tiles(m, n, kdim):
    tm = _tile(m, _CFG["tm"])
    tn = _tile(n, _CFG["tn"])
    tk = _tile(kdim, _CFG["tk"])
    # Guarantee >= 2 blocks along a parallel axis when the grid would otherwise be
    # (1, 1, K): v7x shards parallel grid axes across its 2 TensorCores.
    if m // tm == 1 and n // tn == 1 and n % 256 == 0:
        tn = _tile(n, n // 2)
    return tm, tn, tk


# ----------------------------- Pallas kernels -----------------------------

def _gate_up_act_kernel(x_ref, wg_ref, wu_ref, o_ref, acc_g, acc_u, *, act):
    """Fused gate_proj + up_proj + act_fn(gate)*up over one (tm, tn) output tile."""
    k = pl.program_id(2)

    x = x_ref[...]        # (tm, tk), shared by both matmuls (single DMA of x per step)
    wg = wg_ref[...]
    wu = wu_ref[...]

    @pl.when(k == 0)
    def _():
        # First reduction step: direct store (skips a zero-fill pass over fp32 scratch).
        acc_g[...] = jnp.dot(x, wg, preferred_element_type=jnp.float32)
        acc_u[...] = jnp.dot(x, wu, preferred_element_type=jnp.float32)

    @pl.when(k > 0)
    def _():
        acc_g[...] += jnp.dot(x, wg, preferred_element_type=jnp.float32)
        acc_u[...] += jnp.dot(x, wu, preferred_element_type=jnp.float32)

    @pl.when(k == pl.num_programs(2) - 1)
    def _():
        g = acc_g[...]
        u = acc_u[...]
        o_ref[...] = (_ACT2FN[act](g) * u).astype(o_ref.dtype)


def _matmul_kernel(x_ref, w_ref, o_ref, acc):
    """Standard tiled matmul with fp32 accumulator (down_proj)."""
    k = pl.program_id(2)

    x = x_ref[...]
    w = w_ref[...]

    @pl.when(k == 0)
    def _():
        acc[...] = jnp.dot(x, w, preferred_element_type=jnp.float32)

    @pl.when(k > 0)
    def _():
        acc[...] += jnp.dot(x, w, preferred_element_type=jnp.float32)

    @pl.when(k == pl.num_programs(2) - 1)
    def _():
        o_ref[...] = acc[...].astype(o_ref.dtype)


# ----------------------------- Pallas wrappers -----------------------------

def fused_gate_up_act(x2d, w_gate, w_up, *, act="silu", out_dtype=None):
    m, kdim = x2d.shape
    n = w_gate.shape[1]
    out_dtype = out_dtype or x2d.dtype
    tm, tn, tk = _select_tiles(m, n, kdim)
    grid = (m // tm, n // tn, kdim // tk)
    return pl.pallas_call(
        functools.partial(_gate_up_act_kernel, act=act),
        out_shape=jax.ShapeDtypeStruct((m, n), out_dtype),
        grid_spec=pltpu.PrefetchScalarGridSpec(
            num_scalar_prefetch=0,
            grid=grid,
            in_specs=[
                pl.BlockSpec((tm, tk), lambda i, j, k: (i, k)),
                pl.BlockSpec((tk, tn), lambda i, j, k: (k, j)),
                pl.BlockSpec((tk, tn), lambda i, j, k: (k, j)),
            ],
            out_specs=pl.BlockSpec((tm, tn), lambda i, j, k: (i, j)),
            scratch_shapes=[
                pltpu.VMEM((tm, tn), jnp.float32),
                pltpu.VMEM((tm, tn), jnp.float32),
            ],
        ),
        compiler_params=_compiler_params(),
    )(x2d, w_gate, w_up)


def tiled_matmul(x2d, w, *, out_dtype=None):
    m, kdim = x2d.shape
    n = w.shape[1]
    out_dtype = out_dtype or x2d.dtype
    tm, tn, tk = _select_tiles(m, n, kdim)
    grid = (m // tm, n // tn, kdim // tk)
    return pl.pallas_call(
        _matmul_kernel,
        out_shape=jax.ShapeDtypeStruct((m, n), out_dtype),
        grid_spec=pltpu.PrefetchScalarGridSpec(
            num_scalar_prefetch=0,
            grid=grid,
            in_specs=[
                pl.BlockSpec((tm, tk), lambda i, j, k: (i, k)),
                pl.BlockSpec((tk, tn), lambda i, j, k: (k, j)),
            ],
            out_specs=pl.BlockSpec((tm, tn), lambda i, j, k: (i, j)),
            scratch_shapes=[pltpu.VMEM((tm, tn), jnp.float32)],
        ),
        compiler_params=_compiler_params(),
    )(x2d, w)


# ----------------------------- module forward -----------------------------

def prepare_mlp_weights(w_gate, w_up, w_down, compute_dtype=jnp.bfloat16):
    """One-time (load-time) weight conversion; hoists the per-forward fp32->bf16 cast."""
    return (w_gate.astype(compute_dtype),
            w_up.astype(compute_dtype),
            w_down.astype(compute_dtype))


def quant_llama_mlp_forward(x, w_gate, w_up, w_down, *, hidden_act="silu",
                            compute_dtype=jnp.bfloat16):
    """QuantLlamaMLP.forward with quantization disabled.

    x: [B, S, D]; w_gate/w_up: [D, FFN]; w_down: [FFN, D] (already transposed
    from torch's [out, in]). Llama MLP has no biases. Weights should already be
    in compute_dtype (see prepare_mlp_weights); they are cast here only as a
    fallback.
    """
    # TODO(synk): fake-quant paths (QuantLinear / DuQuantLinear / QuantSwiglu
    # quantizers) are disabled by default (use_weight_quant=use_act_quant=False)
    # and are not modeled; with quant off the 'illm'/'duquant'/default branches
    # compute the same math implemented here.
    orig_dtype = x.dtype
    b, s, d = x.shape
    m = b * s
    x2d = x.reshape(m, d).astype(compute_dtype)

    wg = w_gate if w_gate.dtype == compute_dtype else w_gate.astype(compute_dtype)
    wu = w_up if w_up.dtype == compute_dtype else w_up.astype(compute_dtype)
    wd = w_down if w_down.dtype == compute_dtype else w_down.astype(compute_dtype)

    # Pad the token dim to a multiple of 128 so ragged M tiles legally instead of
    # forcing a full-extent row block.
    mp = -(-m // 128) * 128
    if mp != m:
        x2d = jnp.pad(x2d, ((0, mp - m), (0, 0)))

    h = fused_gate_up_act(x2d, wg, wu, act=hidden_act, out_dtype=compute_dtype)
    y = tiled_matmul(h, wd, out_dtype=orig_dtype)

    if mp != m:
        y = y[:m]
    return y.reshape(b, s, d)


# ----------------------------- main -----------------------------

if __name__ == "__main__":
    B, S, D, FFN = 2, 64, 256, 1024

    key = jax.random.PRNGKey(0)
    kx, kg, ku, kd = jax.random.split(key, 4)
    x = jax.random.normal(kx, (B, S, D), dtype=jnp.float32)
    w_gate = jax.random.normal(kg, (D, FFN), dtype=jnp.float32) * 0.05
    w_up = jax.random.normal(ku, (D, FFN), dtype=jnp.float32) * 0.05
    w_down = jax.random.normal(kd, (FFN, D), dtype=jnp.float32) * 0.05

    # Load-time weight conversion (hoisted out of the forward path).
    wg_bf16, wu_bf16, wd_bf16 = prepare_mlp_weights(w_gate, w_up, w_down)
    wg_bf16, wu_bf16, wd_bf16 = jax.block_until_ready((wg_bf16, wu_bf16, wd_bf16))

    out = quant_llama_mlp_forward(x, wg_bf16, wu_bf16, wd_bf16, hidden_act="silu")
    out = jax.block_until_ready(out)

    # fp32 pure-JAX reference of down(silu(gate(x)) * up(x))
    x2d = x.reshape(-1, D)
    g = x2d @ w_gate
    u = x2d @ w_up
    ref = ((g * jax.nn.sigmoid(g)) * u) @ w_down
    ref = ref.reshape(B, S, D)
    ref = jax.block_until_ready(ref)

    assert out.shape == (B, S, D), out.shape
    if not jnp.allclose(out, ref, atol=3e-2, rtol=3e-2):
        max_err = float(jnp.max(jnp.abs(out - ref)))
        raise AssertionError(f"Pallas output mismatch vs reference (max abs err {max_err})")

    print("KERNEL_OK")
</pallas_src>

<mosaic_0001>
module attributes {stable_mosaic.version = 11 : i64} {
  func.func @_gate_up_act_kernel(%arg0: i32, %arg1: i32, %arg2: i32, %arg3: memref<128x256xbf16, #tpu.memory_space<vmem>>, %arg4: memref<256x512xbf16, #tpu.memory_space<vmem>>, %arg5: memref<256x512xbf16, #tpu.memory_space<vmem>>, %arg6: memref<128x512xbf16, #tpu.memory_space<vmem>>, %arg7: memref<128x512xf32, #tpu.memory_space<vmem>>, %arg8: memref<128x512xf32, #tpu.memory_space<vmem>>) attributes {dimension_semantics = [#tpu.dimension_semantics<parallel>, #tpu.dimension_semantics<parallel>, #tpu.dimension_semantics<arbitrary>], iteration_bounds = array<i64: 1, 2, 1>, scalar_prefetch = 0 : i64, scratch_operands = 2 : i64, tpu.core_type = #tpu.core_type<tc>, window_params = [{transform_indices = @transform_0, window_bounds = array<i64: 128, 256>}, {transform_indices = @transform_1, window_bounds = array<i64: 256, 512>}, {transform_indices = @transform_2, window_bounds = array<i64: 256, 512>}, {transform_indices = @transform_3, window_bounds = array<i64: 128, 512>}]} {
    %c0 = arith.constant 0 : index
    %c0_0 = arith.constant 0 : index
    %0 = vector.load %arg3[%c0, %c0_0] : memref<128x256xbf16, #tpu.memory_space<vmem>>, vector<128x256xbf16>
    %c0_1 = arith.constant 0 : index
    %c0_2 = arith.constant 0 : index
    %1 = vector.load %arg4[%c0_1, %c0_2] : memref<256x512xbf16, #tpu.memory_space<vmem>>, vector<256x512xbf16>
    %c0_3 = arith.constant 0 : index
    %c0_4 = arith.constant 0 : index
    %2 = vector.load %arg5[%c0_3, %c0_4] : memref<256x512xbf16, #tpu.memory_space<vmem>>, vector<256x512xbf16>
    %c0_i32 = arith.constant 0 : i32
    %3 = arith.cmpi eq, %arg2, %c0_i32 : i32
    %4 = arith.extui %3 : i1 to i32
    %c0_i32_5 = arith.constant 0 : i32
    %5 = arith.cmpi ne, %4, %c0_i32_5 : i32
    scf.if %5 {
      %cst = arith.constant dense<0.000000e+00> : vector<128x512xf32>
      %12 = tpu.matmul %0, %1, %cst {dimension_numbers = #tpu.dot_dimension_numbers<[1], [0], [0], [1], [0, 0, 1, 1], [], []>} : vector<128x256xbf16>, vector<256x512xbf16>, vector<128x512xf32> -> vector<128x512xf32>
      %c0_10 = arith.constant 0 : index
      %c0_11 = arith.constant 0 : index
      %13 = vector.load %arg7[%c0_10, %c0_11] : memref<128x512xf32, #tpu.memory_space<vmem>>, vector<128x512xf32>
      tpu.vector_store %arg7[%c0_10, %c0_11], %12 {strides = array<i32>} : memref<128x512xf32, #tpu.memory_space<vmem>>, vector<128x512xf32>,
      %cst_12 = arith.constant dense<0.000000e+00> : vector<128x512xf32>
      %14 = tpu.matmul %0, %2, %cst_12 {dimension_numbers = #tpu.dot_dimension_numbers<[1], [0], [0], [1], [0, 0, 1, 1], [], []>} : vector<128x256xbf16>, vector<256x512xbf16>, vector<128x512xf32> -> vector<128x512xf32>
      %c0_13 = arith.constant 0 : index
      %c0_14 = arith.constant 0 : index
      %15 = vector.load %arg8[%c0_13, %c0_14] : memref<128x512xf32, #tpu.memory_space<vmem>>, vector<128x512xf32>
      tpu.vector_store %arg8[%c0_13, %c0_14], %14 {strides = array<i32>} : memref<128x512xf32, #tpu.memory_space<vmem>>, vector<128x512xf32>,
    } else {
    }
    %c0_i32_6 = arith.constant 0 : i32
    %6 = arith.cmpi sgt, %arg2, %c0_i32_6 : i32
    %7 = arith.extui %6 : i1 to i32
    %c0_i32_7 = arith.constant 0 : i32
    %8 = arith.cmpi ne, %7, %c0_i32_7 : i32
    scf.if %8 {
      %c0_10 = arith.constant 0 : index
      %c0_11 = arith.constant 0 : index
      %12 = vector.load %arg7[%c0_10, %c0_11] : memref<128x512xf32, #tpu.memory_space<vmem>>, vector<128x512xf32>
      %cst = arith.constant dense<0.000000e+00> : vector<128x512xf32>
      %13 = tpu.matmul %0, %1, %cst {dimension_numbers = #tpu.dot_dimension_numbers<[1], [0], [0], [1], [0, 0, 1, 1], [], []>} : vector<128x256xbf16>, vector<256x512xbf16>, vector<128x512xf32> -> vector<128x512xf32>
      %14 = arith.addf %12, %13 : vector<128x512xf32>
      %c0_12 = arith.constant 0 : index
      %c0_13 = arith.constant 0 : index
      %15 = vector.load %arg7[%c0_12, %c0_13] : memref<128x512xf32, #tpu.memory_space<vmem>>, vector<128x512xf32>
      tpu.vector_store %arg7[%c0_12, %c0_13], %14 {strides = array<i32>} : memref<128x512xf32, #tpu.memory_space<vmem>>, vector<128x512xf32>,
      %c0_14 = arith.constant 0 : index
      %c0_15 = arith.constant 0 : index
      %16 = vector.load %arg8[%c0_14, %c0_15] : memref<128x512xf32, #tpu.memory_space<vmem>>, vector<128x512xf32>
      %cst_16 = arith.constant dense<0.000000e+00> : vector<128x512xf32>
      %17 = tpu.matmul %0, %2, %cst_16 {dimension_numbers = #tpu.dot_dimension_numbers<[1], [0], [0], [1], [0, 0, 1, 1], [], []>} : vector<128x256xbf16>, vector<256x512xbf16>, vector<128x512xf32> -> vector<128x512xf32>
      %18 = arith.addf %16, %17 : vector<128x512xf32>
      %c0_17 = arith.constant 0 : index
      %c0_18 = arith.constant 0 : index
      %19 = vector.load %arg8[%c0_17, %c0_18] : memref<128x512xf32, #tpu.memory_space<vmem>>, vector<128x512xf32>
      tpu.vector_store %arg8[%c0_17, %c0_18], %18 {strides = array<i32>} : memref<128x512xf32, #tpu.memory_space<vmem>>, vector<128x512xf32>,
    } else {
    }
    %c0_i32_8 = arith.constant 0 : i32
    %9 = arith.cmpi eq, %arg2, %c0_i32_8 : i32
    %10 = arith.extui %9 : i1 to i32
    %c0_i32_9 = arith.constant 0 : i32
    %11 = arith.cmpi ne, %10, %c0_i32_9 : i32
    scf.if %11 {
      %c0_10 = arith.constant 0 : index
      %c0_11 = arith.constant 0 : index
      %12 = vector.load %arg7[%c0_10, %c0_11] : memref<128x512xf32, #tpu.memory_space<vmem>>, vector<128x512xf32>
      %c0_12 = arith.constant 0 : index
      %c0_13 = arith.constant 0 : index
      %13 = vector.load %arg8[%c0_12, %c0_13] : memref<128x512xf32, #tpu.memory_space<vmem>>, vector<128x512xf32>
      %14 = arith.negf %12 : vector<128x512xf32>
      %15 = math.exp %14 : vector<128x512xf32>
      %cst = arith.constant 1.000000e+00 : f32
      %16 = vector.broadcast %cst : f32 to vector<128x512xf32>
      %17 = arith.addf %16, %15 : vector<128x512xf32>
      %18 = arith.divf %16, %17 : vector<128x512xf32>
      %19 = arith.mulf %12, %18 : vector<128x512xf32>
      %20 = arith.mulf %19, %13 : vector<128x512xf32>
      %21 = arith.truncf %20 : vector<128x512xf32> to vector<128x512xbf16>
      %c0_14 = arith.constant 0 : index
      %c0_15 = arith.constant 0 : index
      %22 = vector.load %arg6[%c0_14, %c0_15] : memref<128x512xbf16, #tpu.memory_space<vmem>>, vector<128x512xbf16>
      tpu.vector_store %arg6[%c0_14, %c0_15], %21 {strides = array<i32>} : memref<128x512xbf16, #tpu.memory_space<vmem>>, vector<128x512xbf16>,
    } else {
    }
    return
  }
  func.func @transform_0(%arg0: i32, %arg1: i32, %arg2: i32) -> (i32, i32) {
    %c0_i32 = arith.constant 0 : i32
    return %arg0, %arg2 : i32, i32
  }
  func.func @transform_1(%arg0: i32, %arg1: i32, %arg2: i32) -> (i32, i32) {
    %c0_i32 = arith.constant 0 : i32
    return %arg2, %arg1 : i32, i32
  }
  func.func @transform_2(%arg0: i32, %arg1: i32, %arg2: i32) -> (i32, i32) {
    %c0_i32 = arith.constant 0 : i32
    return %arg2, %arg1 : i32, i32
  }
  func.func @transform_3(%arg0: i32, %arg1: i32, %arg2: i32) -> (i32, i32) {
    %c0_i32 = arith.constant 0 : i32
    return %arg0, %arg1 : i32, i32
  }
}

</mosaic_0001>

<bundles_post_ra>
// kernel: tpu_custom_call.1
= control target key start
LH: loop header
LB: loop body
LE: loop exit
PB: predicated region body
PF: predicated region fallthrough
CT: control target
= control target key end

     0   :  { %8 = vsyncpa [#allocation5], 0  ;;  %s6487_s0 = inlined_call_operand.hbm [shape: bf16[128,256], index: 0, kind: input, shape index: {}]   ;;  %s6488_s1 = inlined_call_operand.hbm [shape: bf16[256,1024], index: 1, kind: input, shape index: {}]   ;;  %s6489_s2 = inlined_call_operand.hbm [shape: bf16[256,1024], index: 2, kind: input, shape index: {}]   ;;  %s6490_s3 = inlined_call_operand.hbm [shape: bf16[128,1024], index: 3, kind: output, shape index: {}]  }
   0x1   :  { %9 = vsyncpa [#allocation8], 0 }
   0x2   :  { %11 = vsyncpa [#allocation8 + $0x1], 0 }
   0x3   :  { %12 = vsyncpa [#allocation6], 0 }
   0x4   :  { %14 = vsyncpa [#allocation6 + $0x1], 0  ;;  %s5521_s12 = smov 0   ;;  %s5523_s13 = smov 0  }
   0x5   :  { %s5525_s14 = smov 0   ;;  %s5527_s15 = smov 0  }
   0x6   :  { %s5529_s16 = smov 0   ;;  %s5531_s17 = smov 0  }
   0x7 LB: > { %s35_s18 = sadd.s32 1, %s5483_s16  ;;  %s76_s19 = sadd.s32 1, %s5475_s14  ;;  %s5487_s17 = sphi %s5531_s17, %s20_s17   ;;  %s5483_s16 = sphi %s5529_s16, %s6642_s16   ;;  %s5479_s15 = sphi %s5527_s15, %s6641_s15   ;;  %s5475_s14 = sphi %s5525_s14, %s6640_s14   ;;  %s5471_s13 = sphi %s5523_s13, %s6639_s13   ;;  %s5467_s12 = sphi %s5521_s12, %s6638_s12  }
   0x8   : > { %p37_p0 = scmp.ge.s32.totalorder %s35_s18, 2  ;;  %p83_p1 = scmp.ne.s32.totalorder %s5475_s14, %s5471_s13 }
   0x9   : > { %p84_p2 = scmp.eq.s32.totalorder %s5487_s17, 0  ;;  %p4781_p5 = scmp.lt.s32.totalorder %s5487_s17, 2 }
   0xa   : > { %s6644_s18 = smov (%p37_p0, %s35_s18), 0  ;;  %s188_s21 = sand.u32 1, %s5487_s17  }
   0xb   : > { %p85_p4 = por %p84_p2, %p83_p1  ;;  %s72_s20 = ssub.s32 %s5483_s16, %s6644_s18 }
   0xc   : > { %p74_p6 = scmp.eq.s32.totalorder %s72_s20, 0  ;;  %s190_s22 = sand.u32 1, %s5475_s14  }
   0xd   : > { %s4720_s23 = sshll.u32 %s5483_s16, 8  ;;  %s5571_s25 = sshll.u32 %s190_s22, 9 }
   0xe   : > { %s5569_s24 = scalar_select %p74_p6, %s5475_s14, %s76_s19  }
   0xf   : > { %s5578_s28 = scalar_lea.hbm %s6488_s1, %s4720_s23  ;;  %p5580_p7 = pnand %p4781_p5, %p85_p4 }
  0x10   : > { %s192_s30 = scalar_lea.vmem [#allocation7], %s5571_s25  ;;  %s5587_s5 = scalar_lea.sflag [#allocation8], %s188_s21 }
  0x11   : > { %s202_s4 = sshll.u32 %s192_s30, 4  ;;  %s5313_s6 = scalar_lea.hbm %s5578_s28, 8192  ;;  %s5585_s4 = int_to_ptr.vmem [resolvable:$true] %s202_s4 }
  0x12   : > { %p5314_p8 = scmp.ne.s32.totalorder %s5578_s28, %s5313_s6  ;;  %p5315_p9 = pneg %p5580_p7 }
  0x13   : > { %s5318_s9 = scalar_lea.hbm %s6488_s1, 16384  ;;  %p5319_p12 = scmp.lt.u32.totalorder %s5578_s28, %s6488_s1 }
  0x14   : > { %p5316_p10 = pnand %p5315_p9, %p5314_p8  ;;  %p5320_p13 = scmp.lt.u32.totalorder %s5318_s9, %s5313_s6 }
  0x15   : > { %p5322_p2 = scmp.lt.u32.totalorder %s5313_s6, %s5578_s28 }
  0x16   : > { %p5317_p11 = pneg %p5316_p10  ;;  %p5321_p0 = por %p5320_p13, %p5319_p12 }
  0x18   : > { %p5323_p4 = por %p5322_p2, %p5321_p0 }
  0x1a   : > { %p5324_p5 = pnand %p5323_p4, %p5317_p11 }
  0x1c   : > { %5327 = shalt.err (!%p5324_p5)
}
  0x1d   : > { %s5328_s19 = scalar_lea.vmem %s5585_s4, 8192  ;;  %s5489_s20 = smov [#allocation7]  }
  0x1e   : > { %p5329_p6 = scmp.ne.s32.totalorder %s5585_s4, %s5328_s19  ;;  %s5333_s21 = sshll.u32 %s5489_s20, 4  ;;  %s5334_s21 = int_to_ptr.vmem [resolvable:$false] %s5333_s21 }
  0x1f   : > { %s5335_s22 = scalar_lea.vmem %s5334_s21, 16384  ;;  %p5336_p3 = scmp.lt.s32.totalorder %s5585_s4, %s5334_s21 }
  0x20   : > { %p5331_p8 = pnand %p5329_p6, %p5315_p9  ;;  %p5337_p12 = scmp.lt.s32.totalorder %s5335_s22, %s5328_s19 }
  0x22   : > { %p5332_p10 = pneg %p5331_p8  ;;  %p5338_p13 = por %p5337_p12, %p5336_p3 }
  0x24   : > { %p5339_p0 = pnand %p5338_p13, %p5332_p10 }
  0x26   : > { %5342 = shalt.err (!%p5339_p0)
}
  0x27   : > { %s6491_s26 = smov 512   ;;  %s5491_s27 = smov 256  }
  0x28   : > { %s5492_s30 = smov 16   ;;  %s5623_s8 = scalar_lea.hbm %s6489_s2, %s4720_s23 }
  0x29   : > { %4772 = dma.hbm_to_vmem [thread:$0]  (!%p5580_p7), %s5578_s28, 8192, %s5585_s4, %s5587_s5, %s6491_s26, %s5491_s27, %s5492_s30  }
  0x2a   : > { %s216_s9 = scalar_lea.vmem [#allocation9], %s5571_s25  ;;  %s5627_s11 = sadd.s32 4294967295, %s5487_s17  }
  0x2b   : > { %s226_s10 = sshll.u32 %s216_s9, 4  ;;  %s4316_s19 = sadd.s32 4294967294, %s5487_s17   ;;  %s5653_s10 = int_to_ptr.vmem [resolvable:$true] %s226_s10 }
  0x2c   : > { %p89_p3 = scmp.ne.s32.totalorder %s5471_s13, %s5467_s12  ;;  %p6492_p11 = scmp.eq.s32.totalorder %s5627_s11, 0 }
  0x2d   : > { %p143_p2 = scmp.eq.s32.totalorder %s5627_s11, 1  ;;  %p149_p4 = scmp.eq.s32.totalorder %s4316_s19, 1 }
  0x2e   : > { %p5636_p5 = por %p6492_p11, %p89_p3  ;;  %p4317_p6 = scmp.ge.s32.totalorder %s5487_s17, 1 }
  0x2f   : > { %p5644_p8 = por %p143_p2, %p83_p1  ;;  %p5648_p10 = por %p149_p4, %p89_p3 }
  0x30   : > { %s6539_s28 = scalar_select %p5636_p5, 1, 0 }
  0x31   : > { %s6540_s23 = scalar_select %p5644_p8, 1, 0 }
  0x32   : > { %s6541_s25 = scalar_select %p5648_p10, 1, 0 }
  0x33   : > { %p156_p12 = scmp.lt.s32.totalorder %s5487_s17, 3  ;;  %s5493_s20 = smov [#allocation4]  }
  0x34   : > { %s174_s21 = sshll.u32 %s5493_s20, 4  ;;  %s5343_s22 = scalar_lea.hbm %s5623_s8, 8192  ;;  %s5661_s21 = int_to_ptr.vmem [resolvable:$true] %s174_s21 }
  0x35   : > { %p5655_p13 = pnand %p4317_p6, %p156_p12  ;;  %p5344_p0 = scmp.ne.s32.totalorder %s5623_s8, %s5343_s22 }
  0x36   : > { %s5348_s9 = scalar_lea.hbm %s6489_s2, 16384  ;;  %p5349_p4 = scmp.lt.u32.totalorder %s5623_s8, %s6489_s2 }
  0x37   : > { %s6542_s4 = scalar_select %p5655_p13, 1, 0 }
  0x38   : > { %p5346_p3 = pnand %p5344_p0, %p5315_p9  ;;  %p5350_p6 = scmp.lt.u32.totalorder %s5348_s9, %s5343_s22 }
  0x39   : > { %p5352_p11 = scmp.lt.u32.totalorder %s5343_s22, %s5623_s8 }
  0x3a   : > { %p5347_p2 = pneg %p5346_p3  ;;  %p5351_p12 = por %p5350_p6, %p5349_p4 }
  0x3c   : > { %p5353_p1 = por %p5352_p11, %p5351_p12 }
  0x3e   : > { %p5354_p10 = pnand %p5353_p1, %p5347_p2 }
  0x40   : > { %5357 = shalt.err (!%p5354_p10)
}
  0x41   : > { %s5358_s20 = scalar_lea.vmem %s5653_s10, 8192  ;;  %s5494_s6 = smov [#allocation9]  }
  0x42   : > { %p5359_p0 = scmp.ne.s32.totalorder %s5653_s10, %s5358_s20  ;;  %s5363_s7 = sshll.u32 %s5494_s6, 4  ;;  %s5364_s7 = int_to_ptr.vmem [resolvable:$false] %s5363_s7 }
  0x43   : > { %s5365_s26 = scalar_lea.vmem %s5364_s7, 16384  ;;  %p5366_p5 = scmp.lt.s32.totalorder %s5653_s10, %s5364_s7 }
  0x44   : > { %p5361_p3 = pnand %p5359_p0, %p5315_p9  ;;  %p5367_p4 = scmp.lt.s32.totalorder %s5365_s26, %s5358_s20 }
  0x46   : > { %p5362_p8 = pneg %p5361_p3  ;;  %p5368_p6 = por %p5367_p4, %p5366_p5 }
  0x48   : > { %p5369_p11 = pnand %p5368_p6, %p5362_p8 }
  0x4a   : > { %5372 = shalt.err (!%p5369_p11)
}
  0x4b   : > { %s6543_s22 = smov 512   ;;  %p6544_p9 = scmp.eq.s32.totalorder %s5627_s11, 0 }
  0x4c   : > { %4775 = dma.hbm_to_vmem [thread:$0]  (!%p5580_p7), %s5623_s8, 8192, %s5653_s10, %s5587_s5, %s6543_s22, %s5491_s27, %s5492_s30  }
  0x4d   : > { %p6545_p10 = pneg %p5655_p13  ;;  %s5373_s29 = scalar_lea.hbm %s6487_s0, 2048 }
  0x4e   : > { %p5374_p5 = scmp.ne.s32.totalorder %s6487_s0, %s5373_s29  ;;  %p5380_p12 = scmp.lt.u32.totalorder %s5373_s29, %s6487_s0 }
  0x4f   : > { %p5695_p1 = pnand %p6545_p10, %p6544_p9 }
  0x51   : > { %p5375_p8 = pneg %p5695_p1 }
  0x53   : > { %p5376_p2 = pnand %p5375_p8, %p5374_p5 }
  0x55   : > { %p5377_p7 = pneg %p5376_p2 }
  0x57   : > { %p5382_p0 = pnand %p5380_p12, %p5377_p7 }
  0x59   : > { %5385 = shalt.err (!%p5382_p0)
}
  0x5a   : > { %s5386_s30 = scalar_lea.vmem %s5661_s21, 2048  ;;  %p5394_p11 = scmp.lt.s32.totalorder %s5661_s21, %s5661_s21 }
  0x5b   : > { %p5387_p3 = scmp.ne.s32.totalorder %s5661_s21, %s5386_s30  ;;  %p5395_p9 = scmp.lt.s32.totalorder %s5386_s30, %s5386_s30 }
  0x5d   : > { %p5389_p4 = pnand %p5387_p3, %p5375_p8  ;;  %p5396_p10 = por %p5395_p9, %p5394_p11 }
  0x5f   : > { %p5390_p6 = pneg %p5389_p4 }
  0x61   : > { %p5397_p13 = pnand %p5396_p10, %p5390_p6 }
  0x63   : > { %5400 = shalt.err (!%p5397_p13)
}
  0x64   : > { %s5495_s8 = smov 128   ;;  %s5496_s10 = smov 8  }
  0x65   : > { %4768 = dma.hbm_to_vmem [thread:$0]  (!%p5695_p1), %s6487_s0, 2048, %s5661_s21, [#allocation5], %s5495_s8, %s5495_s8, %s5496_s10  }
  0x66   : > { %p6547_p5 = scmp.ne.s32.totalorder %s6542_s4, 0 }
  0x68   : > { %238 = sbr.rel (%p6547_p5) target bundleno = 563 (0x233), region = 32 }
  0x6f   : > { %p6548_p8 = scmp.eq.s32.totalorder %s5627_s11, 0 }
  0x71   : > { %5454 = dma.done.wait (%p6548_p8), [#allocation5], 2048   ;;  %p6549_p2 = pmov %p6548_p8 }
  0x72   : > { %s244_s19 = sand.u32 1, %s5627_s11   ;;  %s5728_s20 = sand.u32 1, %s5471_s13  }
  0x73   : > { %5456 = vsyncadd (%p6549_p2), [#allocation5], 4294965248  ;;  %s4328_s9 = sshll.u32 %s5728_s20, 9  ;;  %s245_s29 = scalar_lea.sflag [#allocation8], %s244_s19 }
  0x74   : > { %s5733_s21 = scalar_lea.vmem [#allocation7], %s4328_s9  ;;  %p6550_p13 = scmp.ne.s32.totalorder %s6539_s28, 0 }
  0x76   : > { %5458 = dma.done.wait (%p6550_p13), %s245_s29, 16384  }
  0x77   : > { %5460 = vsyncadd (%p6550_p13), %s245_s29, 4294950912  ;;  %v4841_v0 = vld [vmem:[%s5733_s21 + $0x4] ss:$16 sps:$4 sm:$0xff]   ;;  %v4843_v1 = vld [vmem:[%s5733_s21 + $0xc] ss:$16 sps:$4 sm:$0xff]   ;;  %s5792_s11 = scalar_lea.vmem [#allocation9], %s4328_s9 }
  0x78   : > { %841 = vmatprep.subr.bf16.mxu0 %v4841_v0  ;;  %v4845_v2 = vld [vmem:[%s5733_s21] ss:$16 sps:$4 sm:$0xff]   ;;  %v4846_v3 = vld [vmem:[%s5733_s21 + $0x8] ss:$16 sps:$4 sm:$0xff]   ;;  %954 = vmatprep.subr.bf16.mxu1 %v4843_v1  ;;  %v4847_v4 = vld [vmem:[%s5733_s21 + $0x24] ss:$16 sps:$4 sm:$0xff]  }
  0x79   : > { %842 = vmatpush1.bf16.msra.mxu0 %v4845_v2  ;;  %955 = vmatpush1.bf16.msra.mxu1 %v4846_v3  ;;  %v4849_v5 = vld [vmem:[%s5733_s21 + $0x2c] ss:$16 sps:$4 sm:$0xff]   ;;  %v4851_v6 = vld [vmem:[%s5733_s21 + $0x20] ss:$16 sps:$4 sm:$0xff]   ;;  %v4852_v7 = vld [vmem:[%s5733_s21 + $0x28] ss:$16 sps:$4 sm:$0xff]  }
  0x7a   : > { %843 = vmatprep.subr.bf16.mxu0 %v4847_v4  ;;  %956 = vmatprep.subr.bf16.mxu1 %v4849_v5  ;;  %v4853_v8 = vld [vmem:[%s5733_s21 + $0x44] ss:$16 sps:$4 sm:$0xff]   ;;  %v4855_v9 = vld [vmem:[%s5733_s21 + $0x4c] ss:$16 sps:$4 sm:$0xff]   ;;  %v4857_v10 = vld [vmem:[%s5733_s21 + $0x40] ss:$16 sps:$4 sm:$0xff]  }
  0x7b   : > { %v4858_v11 = vld [vmem:[%s5733_s21 + $0x48] ss:$16 sps:$4 sm:$0xff]   ;;  %v4859_v12 = vld [vmem:[%s5733_s21 + $0x64] ss:$16 sps:$4 sm:$0xff]   ;;  %v4861_v13 = vld [vmem:[%s5733_s21 + $0x6c] ss:$16 sps:$4 sm:$0xff]  }
  0x7c   : > { %v4863_v14 = vld [vmem:[%s5733_s21 + $0x60] ss:$16 sps:$4 sm:$0xff]   ;;  %v4864_v15 = vld [vmem:[%s5733_s21 + $0x68] ss:$16 sps:$4 sm:$0xff]   ;;  %v4865_v16 = vld [vmem:[%s5733_s21 + $0x84] ss:$16 sps:$4 sm:$0xff]  }
  0x7d   : > { %844 = vmatpush1.bf16.msra.mxu0 %v4851_v6  ;;  %957 = vmatpush1.bf16.msra.mxu1 %v4852_v7  ;;  %v4867_v17 = vld [vmem:[%s5733_s21 + $0x8c] ss:$16 sps:$4 sm:$0xff]   ;;  %v4869_v18 = vld [vmem:[%s5733_s21 + $0x80] ss:$16 sps:$4 sm:$0xff]   ;;  %v4870_v19 = vld [vmem:[%s5733_s21 + $0x88] ss:$16 sps:$4 sm:$0xff]  }
  0x7e   : > { %845 = vmatprep.subr.bf16.mxu0 %v4853_v8  ;;  %958 = vmatprep.subr.bf16.mxu1 %v4855_v9  ;;  %v4871_v20 = vld [vmem:[%s5733_s21 + $0xa4] ss:$16 sps:$4 sm:$0xff]   ;;  %v4873_v21 = vld [vmem:[%s5733_s21 + $0xac] ss:$16 sps:$4 sm:$0xff]   ;;  %v4875_v22 = vld [vmem:[%s5733_s21 + $0xa0] ss:$16 sps:$4 sm:$0xff]  }
  0x7f   : > { %v4876_v23 = vld [vmem:[%s5733_s21 + $0xa8] ss:$16 sps:$4 sm:$0xff]   ;;  %v4877_v24 = vld [vmem:[%s5733_s21 + $0xc4] ss:$16 sps:$4 sm:$0xff]   ;;  %v4879_v25 = vld [vmem:[%s5733_s21 + $0xcc] ss:$16 sps:$4 sm:$0xff]  }
  0x80   : > { %v4881_v26 = vld [vmem:[%s5733_s21 + $0xc0] ss:$16 sps:$4 sm:$0xff]   ;;  %v4882_v27 = vld [vmem:[%s5733_s21 + $0xc8] ss:$16 sps:$4 sm:$0xff]   ;;  %v4883_v28 = vld [vmem:[%s5733_s21 + $0xe4] ss:$16 sps:$4 sm:$0xff]  }
  0x81   : > { %846 = vmatpush1.bf16.msra.mxu0 %v4857_v10  ;;  %959 = vmatpush1.bf16.msra.mxu1 %v4858_v11  ;;  %v4885_v29 = vld [vmem:[%s5733_s21 + $0xec] ss:$16 sps:$4 sm:$0xff]   ;;  %v4887_v30 = vld [vmem:[%s5733_s21 + $0xe0] ss:$16 sps:$4 sm:$0xff]   ;;  %v4888_v31 = vld [vmem:[%s5733_s21 + $0xe8] ss:$16 sps:$4 sm:$0xff]  }
  0x82   : > { %847 = vmatprep.subr.bf16.mxu0 %v4859_v12  ;;  %960 = vmatprep.subr.bf16.mxu1 %v4861_v13  ;;  %v4889_v32 = vld [vmem:[%s5733_s21 + $0x104] ss:$16 sps:$4 sm:$0xff]   ;;  %v4891_v33 = vld [vmem:[%s5733_s21 + $0x10c] ss:$16 sps:$4 sm:$0xff]   ;;  %v4893_v34 = vld [vmem:[%s5733_s21 + $0x100] ss:$16 sps:$4 sm:$0xff]  }
  0x83   : > { %v4894_v35 = vld [vmem:[%s5733_s21 + $0x108] ss:$16 sps:$4 sm:$0xff]   ;;  %v4895_v36 = vld [vmem:[%s5733_s21 + $0x124] ss:$16 sps:$4 sm:$0xff]   ;;  %v4897_v37 = vld [vmem:[%s5733_s21 + $0x12c] ss:$16 sps:$4 sm:$0xff]  }
  0x84   : > { %v4899_v38 = vld [vmem:[%s5733_s21 + $0x120] ss:$16 sps:$4 sm:$0xff]   ;;  %v4900_v39 = vld [vmem:[%s5733_s21 + $0x128] ss:$16 sps:$4 sm:$0xff]   ;;  %v4901_v40 = vld [vmem:[%s5733_s21 + $0x144] ss:$16 sps:$4 sm:$0xff]  }
  0x85   : > { %848 = vmatpush1.bf16.msra.mxu0 %v4863_v14  ;;  %961 = vmatpush1.bf16.msra.mxu1 %v4864_v15  ;;  %v4903_v41 = vld [vmem:[%s5733_s21 + $0x14c] ss:$16 sps:$4 sm:$0xff]   ;;  %v4905_v42 = vld [vmem:[%s5733_s21 + $0x140] ss:$16 sps:$4 sm:$0xff]   ;;  %v4906_v43 = vld [vmem:[%s5733_s21 + $0x148] ss:$16 sps:$4 sm:$0xff]  }
  0x86   : > { %849 = vmatprep.subr.bf16.mxu0 %v4865_v16  ;;  %962 = vmatprep.subr.bf16.mxu1 %v4867_v17  ;;  %v4907_v44 = vld [vmem:[%s5733_s21 + $0x164] ss:$16 sps:$4 sm:$0xff]   ;;  %v4909_v45 = vld [vmem:[%s5733_s21 + $0x16c] ss:$16 sps:$4 sm:$0xff]   ;;  %v4911_v46 = vld [vmem:[%s5733_s21 + $0x160] ss:$16 sps:$4 sm:$0xff]  }
  0x87   : > { %v4912_v47 = vld [vmem:[%s5733_s21 + $0x168] ss:$16 sps:$4 sm:$0xff]   ;;  %v5787_v48 = vld [vmem:[#allocation4 + $0x4] ss:$8 sps:$4 sm:$0xff]   ;;  %v4917_v51 = vld [vmem:[%s5733_s21 + $0x180] ss:$16 sps:$4 sm:$0xff]  }
  0x88   : > { %v4913_v49 = vld [vmem:[%s5733_s21 + $0x184] ss:$16 sps:$4 sm:$0xff]   ;;  %v4915_v50 = vld [vmem:[%s5733_s21 + $0x18c] ss:$16 sps:$4 sm:$0xff]   ;;  %873 = vmatprep.mubr.bf16.mxu0 %v5787_v48  ;;  %986 = vmatprep.mubr.bf16.mxu1 %v5787_v48  ;;  %v4918_v52 = vld [vmem:[%s5733_s21 + $0x188] ss:$16 sps:$4 sm:$0xff]  }
  0x89   : > { %850 = vmatpush1.bf16.msra.mxu0 %v4869_v18  ;;  %963 = vmatpush1.bf16.msra.mxu1 %v4870_v19  ;;  %v4919_v53 = vld [vmem:[%s5733_s21 + $0x1a4] ss:$16 sps:$4 sm:$0xff]   ;;  %v4921_v54 = vld [vmem:[%s5733_s21 + $0x1ac] ss:$16 sps:$4 sm:$0xff]   ;;  %v4923_v55 = vld [vmem:[%s5733_s21 + $0x1a0] ss:$16 sps:$4 sm:$0xff]  }
  0x8a   : > { %851 = vmatprep.subr.bf16.mxu0 %v4871_v20  ;;  %964 = vmatprep.subr.bf16.mxu1 %v4873_v21  ;;  %v4924_v56 = vld [vmem:[%s5733_s21 + $0x1a8] ss:$16 sps:$4 sm:$0xff]   ;;  %v4925_v57 = vld [vmem:[%s5733_s21 + $0x1c4] ss:$16 sps:$4 sm:$0xff]   ;;  %v4927_v58 = vld [vmem:[%s5733_s21 + $0x1cc] ss:$16 sps:$4 sm:$0xff]  }
  0x8b   : > { %v4929_v59 = vld [vmem:[%s5733_s21 + $0x1c0] ss:$16 sps:$4 sm:$0xff]   ;;  %v4930_v60 = vld [vmem:[%s5733_s21 + $0x1c8] ss:$16 sps:$4 sm:$0xff]   ;;  %v4931_v61 = vld [vmem:[%s5733_s21 + $0x1e4] ss:$16 sps:$4 sm:$0xff]  }
  0x8c   : > { %v4933_v62 = vld [vmem:[%s5733_s21 + $0x1ec] ss:$16 sps:$4 sm:$0xff]   ;;  %v4935_v63 = vld [vmem:[%s5733_s21 + $0x1e0] ss:$16 sps:$4 sm:$0xff]   ;;  %v4936_v0 = vld [vmem:[%s5733_s21 + $0x1e8] ss:$16 sps:$4 sm:$0xff]  }
  0x8d   : > { %852 = vmatpush1.bf16.msra.mxu0 %v4875_v22  ;;  %965 = vmatpush1.bf16.msra.mxu1 %v4876_v23  ;;  %v4942_v1 = vld [vmem:[%s5792_s11 + $0x4] ss:$16 sps:$4 sm:$0xff]   ;;  %v4945_v2 = vld [vmem:[%s5792_s11 + $0xc] ss:$16 sps:$4 sm:$0xff]   ;;  %v5813_v3 = vld [vmem:[#allocation4] ss:$8 sps:$4 sm:$0xff]  }
  0x8e   : > { %853 = vmatprep.subr.bf16.mxu0 %v4877_v24  ;;  %966 = vmatprep.subr.bf16.mxu1 %v4879_v25  ;;  %v4940_v4 = vld [vmem:[%s5792_s11] ss:$16 sps:$4 sm:$0xff]   ;;  %v4943_v5 = vld [vmem:[%s5792_s11 + $0x8] ss:$16 sps:$4 sm:$0xff]   ;;  %v4948_v6 = vld [vmem:[%s5792_s11 + $0x24] ss:$16 sps:$4 sm:$0xff]  }
  0x8f   : > { %v4951_v7 = vld [vmem:[%s5792_s11 + $0x2c] ss:$16 sps:$4 sm:$0xff]   ;;  %v4946_v9 = vld [vmem:[%s5792_s11 + $0x20] ss:$16 sps:$4 sm:$0xff]   ;;  %v4949_v10 = vld [vmem:[%s5792_s11 + $0x28] ss:$16 sps:$4 sm:$0xff]  }
  0x90   : > { %v5819_v8 = vld [vmem:[#allocation4 + $0x14] ss:$8 sps:$4 sm:$0xff]   ;;  %v5829_v13 = vld [vmem:[#allocation4 + $0x10] ss:$8 sps:$4 sm:$0xff]   ;;  %v5835_v18 = vld [vmem:[#allocation4 + $0x24] ss:$8 sps:$4 sm:$0xff]  }
  0x91   : > { %854 = vmatpush1.bf16.msra.mxu0 %v4881_v26  ;;  %967 = vmatpush1.bf16.msra.mxu1 %v4882_v27  ;;  %v4957_v11 = vld [vmem:[%s5792_s11 + $0x44] ss:$16 sps:$4 sm:$0xff]   ;;  %v4960_v12 = vld [vmem:[%s5792_s11 + $0x4c] ss:$16 sps:$4 sm:$0xff]   ;;  %v4955_v14 = vld [vmem:[%s5792_s11 + $0x40] ss:$16 sps:$4 sm:$0xff]  }
  0x92   : > { %855 = vmatprep.subr.bf16.mxu0 %v4883_v28  ;;  %968 = vmatprep.subr.bf16.mxu1 %v4885_v29  ;;  %v4958_v15 = vld [vmem:[%s5792_s11 + $0x48] ss:$16 sps:$4 sm:$0xff]   ;;  %v4963_v16 = vld [vmem:[%s5792_s11 + $0x64] ss:$16 sps:$4 sm:$0xff]   ;;  %v4966_v17 = vld [vmem:[%s5792_s11 + $0x6c] ss:$16 sps:$4 sm:$0xff]  }
  0x93   : > { %v4961_v19 = vld [vmem:[%s5792_s11 + $0x60] ss:$16 sps:$4 sm:$0xff]   ;;  %v4964_v20 = vld [vmem:[%s5792_s11 + $0x68] ss:$16 sps:$4 sm:$0xff]   ;;  %v4972_v21 = vld [vmem:[%s5792_s11 + $0x84] ss:$16 sps:$4 sm:$0xff]  }
  0x94   : > { %v4975_v22 = vld [vmem:[%s5792_s11 + $0x8c] ss:$16 sps:$4 sm:$0xff]   ;;  %v5845_v23 = vld [vmem:[#allocation4 + $0x20] ss:$8 sps:$4 sm:$0xff]   ;;  %v4978_v26 = vld [vmem:[%s5792_s11 + $0xa4] ss:$16 sps:$4 sm:$0xff]  }
  0x95   : > { %856 = vmatpush1.bf16.msra.mxu0 %v4887_v30  ;;  %969 = vmatpush1.bf16.msra.mxu1 %v4888_v31  ;;  %v4970_v24 = vld [vmem:[%s5792_s11 + $0x80] ss:$16 sps:$4 sm:$0xff]   ;;  %v4973_v25 = vld [vmem:[%s5792_s11 + $0x88] ss:$16 sps:$4 sm:$0xff]   ;;  %v4981_v27 = vld [vmem:[%s5792_s11 + $0xac] ss:$16 sps:$4 sm:$0xff]  }
  0x96   : > { %857 = vmatprep.subr.bf16.mxu0 %v4889_v32  ;;  %970 = vmatprep.subr.bf16.mxu1 %v4891_v33  ;;  %v5851_v28 = vld [vmem:[#allocation4 + $0x34] ss:$8 sps:$4 sm:$0xff]   ;;  %v4976_v29 = vld [vmem:[%s5792_s11 + $0xa0] ss:$16 sps:$4 sm:$0xff]   ;;  %v4979_v30 = vld [vmem:[%s5792_s11 + $0xa8] ss:$16 sps:$4 sm:$0xff]  }
  0x97   : > { %v4987_v31 = vld [vmem:[%s5792_s11 + $0xc4] ss:$16 sps:$4 sm:$0xff]   ;;  %v4990_v32 = vld [vmem:[%s5792_s11 + $0xcc] ss:$16 sps:$4 sm:$0xff]   ;;  %v5861_v33 = vld [vmem:[#allocation4 + $0x30] ss:$8 sps:$4 sm:$0xff]  }
  0x98   : > { %s4330_s28 = sshll.u32 %s5728_s20, 8  ;;  %s4754_s6 = sshll.u32 %s5479_s15, 8 }
  0x99   : > { %858 = vmatpush1.bf16.msra.mxu0 %v4893_v34  ;;  %971 = vmatpush1.bf16.msra.mxu1 %v4894_v35  ;;  %v4985_v34 = vld [vmem:[%s5792_s11 + $0xc0] ss:$16 sps:$4 sm:$0xff]   ;;  %v4988_v35 = vld [vmem:[%s5792_s11 + $0xc8] ss:$16 sps:$4 sm:$0xff]   ;;  %s6272_s4 = scalar_lea.vmem [#allocation10], %s4330_s28  ;;  %s6434_s30 = scalar_lea.hbm %s6490_s3, %s4754_s6 }
  0x9a   : > { %859 = vmatprep.subr.bf16.mxu0 %v4895_v36  ;;  %972 = vmatprep.subr.bf16.mxu1 %v4897_v37  ;;  %v4993_v36 = vld [vmem:[%s5792_s11 + $0xe4] ss:$16 sps:$4 sm:$0xff]   ;;  %v4996_v37 = vld [vmem:[%s5792_s11 + $0xec] ss:$16 sps:$4 sm:$0xff]   ;;  %s4185_s7 = sshll.u32 %s6272_s4, 4  ;;  %s4169_s15 = scalar_lea.sflag [#allocation6], %s5728_s20  ;;  %s6436_s7 = int_to_ptr.vmem [resolvable:$true] %s4185_s7 }
  0x9b   : > { %s5401_s8 = scalar_lea.vmem %s6436_s7, 4096  ;;  %p6635_p7 = scmp.ne.s32.totalorder %s6540_s23, 0 }
  0x9c   : > { %p5402_p1 = scmp.ne.s32.totalorder %s6436_s7, %s5401_s8  ;;  %s5497_s10 = smov [#allocation10]  }
  0x9d   : > { %860 = vmatpush1.bf16.msra.mxu0 %v4899_v38  ;;  %973 = vmatpush1.bf16.msra.mxu1 %v4900_v39  ;;  %v5867_v38 = vld [vmem:[#allocation4 + $0x44] ss:$8 sps:$4 sm:$0xff]   ;;  %v4991_v39 = vld [vmem:[%s5792_s11 + $0xe0] ss:$16 sps:$4 sm:$0xff]   ;;  %s5405_s26 = sshll.u32 %s5497_s10, 4  ;;  %s5406_s26 = int_to_ptr.vmem [resolvable:$false] %s5405_s26 }
  0x9e   : > { %861 = vmatprep.subr.bf16.mxu0 %v4901_v40  ;;  %974 = vmatprep.subr.bf16.mxu1 %v4903_v41  ;;  %v4994_v40 = vld [vmem:[%s5792_s11 + $0xe8] ss:$16 sps:$4 sm:$0xff]   ;;  %v5002_v41 = vld [vmem:[%s5792_s11 + $0x104] ss:$16 sps:$4 sm:$0xff]   ;;  %p5403_p12 = pnand %p5402_p1, %p6635_p7  ;;  %s5407_s22 = scalar_lea.vmem %s5406_s26, 8192 }
  0x9f   : > { %p5408_p3 = scmp.lt.s32.totalorder %s6436_s7, %s5406_s26  ;;  %p5409_p4 = scmp.lt.s32.totalorder %s5407_s22, %s5401_s8 }
  0xa0   : > { %p5404_p0 = pneg %p5403_p12 }
  0xa1   : > { %862 = vmatpush1.bf16.msra.mxu0 %v4905_v42  ;;  %975 = vmatpush1.bf16.msra.mxu1 %v4906_v43  ;;  %v5005_v42 = vld [vmem:[%s5792_s11 + $0x10c] ss:$16 sps:$4 sm:$0xff]   ;;  %v5877_v43 = vld [vmem:[#allocation4 + $0x40] ss:$8 sps:$4 sm:$0xff]   ;;  %p5410_p6 = por %p5409_p4, %p5408_p3 }
  0xa2   : > { %863 = vmatprep.subr.bf16.mxu0 %v4907_v44  ;;  %976 = vmatprep.subr.bf16.mxu1 %v4909_v45  ;;  %v5000_v44 = vld [vmem:[%s5792_s11 + $0x100] ss:$16 sps:$4 sm:$0xff]   ;;  %v5003_v45 = vld [vmem:[%s5792_s11 + $0x108] ss:$16 sps:$4 sm:$0xff]  }
  0xa3   : > { %p5411_p11 = pnand %p5410_p6, %p5404_p0 }
  0xa5   : > { %864 = vmatpush1.bf16.msra.mxu0 %v4911_v46  ;;  %977 = vmatpush1.bf16.msra.mxu1 %v4912_v47  ;;  %v5008_v46 = vld [vmem:[%s5792_s11 + $0x124] ss:$16 sps:$4 sm:$0xff]   ;;  %v5011_v47 = vld [vmem:[%s5792_s11 + $0x12c] ss:$16 sps:$4 sm:$0xff]  }
  0xa6   : > { %865 = vmatprep.subr.bf16.mxu0 %v4913_v49  ;;  %978 = vmatprep.subr.bf16.mxu1 %v4915_v50  ;;  %v5883_v49 = vld [vmem:[#allocation4 + $0x54] ss:$8 sps:$4 sm:$0xff]   ;;  %v5006_v50 = vld [vmem:[%s5792_s11 + $0x120] ss:$16 sps:$4 sm:$0xff]  }
  0xa9   : > { %866 = vmatpush1.bf16.msra.mxu0 %v4917_v51  ;;  %979 = vmatpush1.bf16.msra.mxu1 %v4918_v52  ;;  %v5009_v51 = vld [vmem:[%s5792_s11 + $0x128] ss:$16 sps:$4 sm:$0xff]   ;;  %v5017_v52 = vld [vmem:[%s5792_s11 + $0x144] ss:$16 sps:$4 sm:$0xff]  }
  0xaa   : > { %867 = vmatprep.subr.bf16.mxu0 %v4919_v53  ;;  %980 = vmatprep.subr.bf16.mxu1 %v4921_v54  ;;  %v5020_v53 = vld [vmem:[%s5792_s11 + $0x14c] ss:$16 sps:$4 sm:$0xff]   ;;  %v5893_v54 = vld [vmem:[#allocation4 + $0x50] ss:$8 sps:$4 sm:$0xff]  }
  0xad   : > { %868 = vmatpush1.bf16.msra.mxu0 %v4923_v55  ;;  %981 = vmatpush1.bf16.msra.mxu1 %v4924_v56  ;;  %v5015_v55 = vld [vmem:[%s5792_s11 + $0x140] ss:$16 sps:$4 sm:$0xff]   ;;  %v5018_v56 = vld [vmem:[%s5792_s11 + $0x148] ss:$16 sps:$4 sm:$0xff]  }
  0xae   : > { %869 = vmatprep.subr.bf16.mxu0 %v4925_v57  ;;  %982 = vmatprep.subr.bf16.mxu1 %v4927_v58  ;;  %v5023_v57 = vld [vmem:[%s5792_s11 + $0x164] ss:$16 sps:$4 sm:$0xff]   ;;  %v5026_v58 = vld [vmem:[%s5792_s11 + $0x16c] ss:$16 sps:$4 sm:$0xff]  }
  0xb1   : > { %870 = vmatpush1.bf16.msra.mxu0 %v4929_v59  ;;  %983 = vmatpush1.bf16.msra.mxu1 %v4930_v60  ;;  %v5899_v59 = vld [vmem:[#allocation4 + $0x64] ss:$8 sps:$4 sm:$0xff]   ;;  %v5021_v60 = vld [vmem:[%s5792_s11 + $0x160] ss:$16 sps:$4 sm:$0xff]  }
  0xb2   : > { %871 = vmatprep.subr.bf16.mxu0 %v4931_v61  ;;  %984 = vmatprep.subr.bf16.mxu1 %v4933_v62  ;;  %v5024_v61 = vld [vmem:[%s5792_s11 + $0x168] ss:$16 sps:$4 sm:$0xff]   ;;  %v5032_v62 = vld [vmem:[%s5792_s11 + $0x184] ss:$16 sps:$4 sm:$0xff]  }
  0xb5   : > { %872 = vmatpush1.bf16.msra.mxu0 %v4935_v63  ;;  %985 = vmatpush1.bf16.msra.mxu1 %v4936_v0  ;;  %v5035_v63 = vld [vmem:[%s5792_s11 + $0x18c] ss:$16 sps:$4 sm:$0xff]   ;;  %v5909_v0 = vld [vmem:[#allocation4 + $0x60] ss:$8 sps:$4 sm:$0xff]  }
  0xb6   : > { %1451 = vmatprep.subr.bf16.mxu0 %v4942_v1  ;;  %1564 = vmatprep.subr.bf16.mxu1 %v4945_v2  ;;  %v5030_v1 = vld [vmem:[%s5792_s11 + $0x180] ss:$16 sps:$4 sm:$0xff]   ;;  %v5033_v2 = vld [vmem:[%s5792_s11 + $0x188] ss:$16 sps:$4 sm:$0xff]  }
  0xb8   : > { %874 = vmatmul.mubr.bf16.vlgmr.msra.gmra.mrb[0].mxu0 %v5813_v3  ;;  %987 = vmatmul.mubr.bf16.vlgmr.msra.gmra.mrb[0].mxu1 %v5813_v3 }
  0xb9   : > { %1452 = vmatpush1.bf16.msra.mxu0 %v4940_v4  ;;  %1565 = vmatpush1.bf16.msra.mxu1 %v4943_v5  ;;  %v5038_v4 = vld [vmem:[%s5792_s11 + $0x1a4] ss:$16 sps:$4 sm:$0xff]   ;;  %v5041_v5 = vld [vmem:[%s5792_s11 + $0x1ac] ss:$16 sps:$4 sm:$0xff]  }
  0xba   : > { %1453 = vmatprep.subr.bf16.mxu0 %v4948_v6  ;;  %1566 = vmatprep.subr.bf16.mxu1 %v4951_v7  ;;  %v5042_v6 = vld [vmem:[#allocation4 + $0x74] ss:$8 sps:$4 sm:$0xff]   ;;  %v5036_v7 = vld [vmem:[%s5792_s11 + $0x1a0] ss:$16 sps:$4 sm:$0xff]  }
  0xbb   : > { %883 = vmatprep.mubr.bf16.mxu0 %v5819_v8  ;;  %996 = vmatprep.mubr.bf16.mxu1 %v5819_v8 }
  0xbd   : > { %1454 = vmatpush1.bf16.msra.mxu0 %v4946_v9  ;;  %1567 = vmatpush1.bf16.msra.mxu1 %v4949_v10  ;;  %v5039_v9 = vld [vmem:[%s5792_s11 + $0x1a8] ss:$16 sps:$4 sm:$0xff]   ;;  %v5047_v10 = vld [vmem:[%s5792_s11 + $0x1c4] ss:$16 sps:$4 sm:$0xff]  }
  0xbe   : > { %1455 = vmatprep.subr.bf16.mxu0 %v4957_v11  ;;  %1568 = vmatprep.subr.bf16.mxu1 %v4960_v12  ;;  %v5050_v11 = vld [vmem:[%s5792_s11 + $0x1cc] ss:$16 sps:$4 sm:$0xff]   ;;  %v5044_v12 = vld [vmem:[#allocation4 + $0x70] ss:$8 sps:$4 sm:$0xff]  }
  0xc0   : > { %884 = vmatmul.mubr.bf16.gmra.mrb[4].mxu0 %v5829_v13  ;;  %997 = vmatmul.mubr.bf16.gmra.mrb[4].mxu1 %v5829_v13 }
  0xc1   : > { %1456 = vmatpush1.bf16.msra.mxu0 %v4955_v14  ;;  %1569 = vmatpush1.bf16.msra.mxu1 %v4958_v15  ;;  %v5045_v14 = vld [vmem:[%s5792_s11 + $0x1c0] ss:$16 sps:$4 sm:$0xff]   ;;  %v5048_v15 = vld [vmem:[%s5792_s11 + $0x1c8] ss:$16 sps:$4 sm:$0xff]  }
  0xc2   : > { %1457 = vmatprep.subr.bf16.mxu0 %v4963_v16  ;;  %1570 = vmatprep.subr.bf16.mxu1 %v4966_v17  ;;  %v5053_v16 = vld [vmem:[%s5792_s11 + $0x1e4] ss:$16 sps:$4 sm:$0xff]   ;;  %v5056_v17 = vld [vmem:[%s5792_s11 + $0x1ec] ss:$16 sps:$4 sm:$0xff]  }
  0xc3   : > { %893 = vmatprep.mubr.bf16.mxu0 %v5835_v18  ;;  %1006 = vmatprep.mubr.bf16.mxu1 %v5835_v18 }
  0xc5   : > { %1458 = vmatpush1.bf16.msra.mxu0 %v4961_v19  ;;  %1571 = vmatpush1.bf16.msra.mxu1 %v4964_v20  ;;  %v5051_v19 = vld [vmem:[%s5792_s11 + $0x1e0] ss:$16 sps:$4 sm:$0xff]   ;;  %v5054_v20 = vld [vmem:[%s5792_s11 + $0x1e8] ss:$16 sps:$4 sm:$0xff]  }
  0xc6   : > { %1459 = vmatprep.subr.bf16.mxu0 %v4972_v21  ;;  %1572 = vmatprep.subr.bf16.mxu1 %v4975_v22 }
  0xc8   : > { %894 = vmatmul.mubr.bf16.gmra.mrb[8].mxu0 %v5845_v23  ;;  %1007 = vmatmul.mubr.bf16.gmra.mrb[8].mxu1 %v5845_v23 }
  0xc9   : > { %1460 = vmatpush1.bf16.msra.mxu0 %v4970_v24  ;;  %1573 = vmatpush1.bf16.msra.mxu1 %v4973_v25 }
  0xca   : > { %1461 = vmatprep.subr.bf16.mxu0 %v4978_v26  ;;  %1574 = vmatprep.subr.bf16.mxu1 %v4981_v27 }
  0xcb   : > { %903 = vmatprep.mubr.bf16.mxu0 %v5851_v28  ;;  %1016 = vmatprep.mubr.bf16.mxu1 %v5851_v28 }
  0xcd   : > { %1462 = vmatpush1.bf16.msra.mxu0 %v4976_v29  ;;  %1575 = vmatpush1.bf16.msra.mxu1 %v4979_v30 }
  0xce   : > { %1463 = vmatprep.subr.bf16.mxu0 %v4987_v31  ;;  %1576 = vmatprep.subr.bf16.mxu1 %v4990_v32 }
  0xd0   : > { %904 = vmatmul.mubr.bf16.gmra.mrb[12].mxu0 %v5861_v33  ;;  %1017 = vmatmul.mubr.bf16.gmra.mrb[12].mxu1 %v5861_v33 }
  0xd1   : > { %1464 = vmatpush1.bf16.msra.mxu0 %v4985_v34  ;;  %1577 = vmatpush1.bf16.msra.mxu1 %v4988_v35 }
  0xd2   : > { %1465 = vmatprep.subr.bf16.mxu0 %v4993_v36  ;;  %1578 = vmatprep.subr.bf16.mxu1 %v4996_v37 }
  0xd3   : > { %913 = vmatprep.mubr.bf16.mxu0 %v5867_v38  ;;  %1026 = vmatprep.mubr.bf16.mxu1 %v5867_v38 }
  0xd5   : > { %1466 = vmatpush1.bf16.msra.mxu0 %v4991_v39  ;;  %1579 = vmatpush1.bf16.msra.mxu1 %v4994_v40 }
  0xd6   : > { %1467 = vmatprep.subr.bf16.mxu0 %v5002_v41  ;;  %1580 = vmatprep.subr.bf16.mxu1 %v5005_v42 }
  0xd8   : > { %914 = vmatmul.mubr.bf16.gmra.mrb[16].mxu0 %v5877_v43  ;;  %1027 = vmatmul.mubr.bf16.gmra.mrb[16].mxu1 %v5877_v43 }
  0xd9   : > { %1468 = vmatpush1.bf16.msra.mxu0 %v5000_v44  ;;  %1581 = vmatpush1.bf16.msra.mxu1 %v5003_v45 }
  0xda   : > { %1469 = vmatprep.subr.bf16.mxu0 %v5008_v46  ;;  %1582 = vmatprep.subr.bf16.mxu1 %v5011_v47 }
  0xdb   : > { %923 = vmatprep.mubr.bf16.mxu0 %v5883_v49  ;;  %1036 = vmatprep.mubr.bf16.mxu1 %v5883_v49 }
  0xdd   : > { %1470 = vmatpush1.bf16.msra.mxu0 %v5006_v50  ;;  %1583 = vmatpush1.bf16.msra.mxu1 %v5009_v51 }
  0xde   : > { %1471 = vmatprep.subr.bf16.mxu0 %v5017_v52  ;;  %1584 = vmatprep.subr.bf16.mxu1 %v5020_v53 }
  0xe0   : > { %924 = vmatmul.mubr.bf16.gmra.mrb[20].mxu0 %v5893_v54  ;;  %1037 = vmatmul.mubr.bf16.gmra.mrb[20].mxu1 %v5893_v54 }
  0xe1   : > { %1472 = vmatpush1.bf16.msra.mxu0 %v5015_v55  ;;  %1585 = vmatpush1.bf16.msra.mxu1 %v5018_v56 }
  0xe2   : > { %1473 = vmatprep.subr.bf16.mxu0 %v5023_v57  ;;  %1586 = vmatprep.subr.bf16.mxu1 %v5026_v58 }
  0xe3   : > { %933 = vmatprep.mubr.bf16.mxu0 %v5899_v59  ;;  %1046 = vmatprep.mubr.bf16.mxu1 %v5899_v59 }
  0xe5   : > { %1474 = vmatpush1.bf16.msra.mxu0 %v5021_v60  ;;  %1587 = vmatpush1.bf16.msra.mxu1 %v5024_v61 }
  0xe6   : > { %1475 = vmatprep.subr.bf16.mxu0 %v5032_v62  ;;  %1588 = vmatprep.subr.bf16.mxu1 %v5035_v63 }
  0xe8   : > { %934 = vmatmul.mubr.bf16.gmra.mrb[24].mxu0 %v5909_v0  ;;  %1047 = vmatmul.mubr.bf16.gmra.mrb[24].mxu1 %v5909_v0 }
  0xe9   : > { %1476 = vmatpush1.bf16.msra.mxu0 %v5030_v1  ;;  %1589 = vmatpush1.bf16.msra.mxu1 %v5033_v2 }
  0xea   : > { %1477 = vmatprep.subr.bf16.mxu0 %v5038_v4  ;;  %1590 = vmatprep.subr.bf16.mxu1 %v5041_v5 }
  0xeb   : > { %943 = vmatprep.mubr.bf16.mxu0 %v5042_v6  ;;  %1056 = vmatprep.mubr.bf16.mxu1 %v5042_v6 }
  0xed   : > { %1478 = vmatpush1.bf16.msra.mxu0 %v5036_v7  ;;  %1591 = vmatpush1.bf16.msra.mxu1 %v5039_v9 }
  0xee   : > { %1479 = vmatprep.subr.bf16.mxu0 %v5047_v10  ;;  %1592 = vmatprep.subr.bf16.mxu1 %v5050_v11 }
  0xf0   : > { %944 = vmatmul.mubr.bf16.gmra.mrb[28].mxu0 %v5044_v12  ;;  %1057 = vmatmul.mubr.bf16.gmra.mrb[28].mxu1 %v5044_v12 }
  0xf1   : > { %1480 = vmatpush1.bf16.msra.mxu0 %v5045_v14  ;;  %1593 = vmatpush1.bf16.msra.mxu1 %v5048_v15 }
  0xf2   : > { %1481 = vmatprep.subr.bf16.mxu0 %v5053_v16  ;;  %1594 = vmatprep.subr.bf16.mxu1 %v5056_v17 }
  0xf3   : > { %1483 = vmatprep.mubr.bf16.mxu0 %v5787_v48  ;;  %1596 = vmatprep.mubr.bf16.mxu1 %v5787_v48 }
  0xf5   : > { %1482 = vmatpush1.bf16.msra.mxu0 %v5051_v19  ;;  %1595 = vmatpush1.bf16.msra.mxu1 %v5054_v20 }
  0xf8   : > { %1484 = vmatmul.mubr.bf16.vlgmr.msra.gmra.mrb[32].mxu0 %v5813_v3  ;;  %1597 = vmatmul.mubr.bf16.vlgmr.msra.gmra.mrb[32].mxu1 %v5813_v3 }
  0xf9   : > { %1493 = vmatprep.mubr.bf16.mxu0 %v5819_v8  ;;  %1606 = vmatprep.mubr.bf16.mxu1 %v5819_v8 }
 0x100   : > { %1494 = vmatmul.mubr.bf16.gmra.mrb[36].mxu0 %v5829_v13  ;;  %1607 = vmatmul.mubr.bf16.gmra.mrb[36].mxu1 %v5829_v13 }
 0x101   : > { %1503 = vmatprep.mubr.bf16.mxu0 %v5835_v18  ;;  %1616 = vmatprep.mubr.bf16.mxu1 %v5835_v18 }
 0x108   : > { %1504 = vmatmul.mubr.bf16.gmra.mrb[40].mxu0 %v5845_v23  ;;  %1617 = vmatmul.mubr.bf16.gmra.mrb[40].mxu1 %v5845_v23 }
 0x109   : > { %1513 = vmatprep.mubr.bf16.mxu0 %v5851_v28  ;;  %1626 = vmatprep.mubr.bf16.mxu1 %v5851_v28 }
 0x110   : > { %1514 = vmatmul.mubr.bf16.gmra.mrb[44].mxu0 %v5861_v33  ;;  %1627 = vmatmul.mubr.bf16.gmra.mrb[44].mxu1 %v5861_v33 }
 0x111   : > { %1523 = vmatprep.mubr.bf16.mxu0 %v5867_v38  ;;  %1636 = vmatprep.mubr.bf16.mxu1 %v5867_v38 }
 0x118   : > { %1524 = vmatmul.mubr.bf16.gmra.mrb[48].mxu0 %v5877_v43  ;;  %1637 = vmatmul.mubr.bf16.gmra.mrb[48].mxu1 %v5877_v43 }
 0x119   : > { %1533 = vmatprep.mubr.bf16.mxu0 %v5883_v49  ;;  %1646 = vmatprep.mubr.bf16.mxu1 %v5883_v49 }
 0x120   : > { %1534 = vmatmul.mubr.bf16.gmra.mrb[52].mxu0 %v5893_v54  ;;  %1647 = vmatmul.mubr.bf16.gmra.mrb[52].mxu1 %v5893_v54 }
 0x121   : > { %1543 = vmatprep.mubr.bf16.mxu0 %v5899_v59  ;;  %1656 = vmatprep.mubr.bf16.mxu1 %v5899_v59 }
 0x128   : > { %1544 = vmatmul.mubr.bf16.gmra.mrb[56].mxu0 %v5909_v0  ;;  %1657 = vmatmul.mubr.bf16.gmra.mrb[56].mxu1 %v5909_v0 }
 0x129   : > { %1553 = vmatprep.mubr.bf16.mxu0 %v5042_v6  ;;  %1666 = vmatprep.mubr.bf16.mxu1 %v5042_v6 }
 0x130   : > { %1554 = vmatmul.mubr.bf16.gmra.mrb[60].mxu0 %v5044_v12  ;;  %1667 = vmatmul.mubr.bf16.gmra.mrb[60].mxu1 %v5044_v12 }
 0x18b   : > { %v5955_v48 = vpop.f32.mrb[0].mxu0  ;;  %v5957_v3 = vpop.f32.mrb[0].mxu1 }
 0x18c   : > { %v4619_v8 = vmul.f32 -1.442695, %v5955_v48  ;;  %v4621_v13 = vmul.f32 -1.442695, %v5957_v3  ;;  %v5961_v18 = vpop.f32.mrb[1].mxu0  ;;  %v5963_v21 = vpop.f32.mrb[1].mxu1 }
 0x18d   : > { %v4620_v22 = vmul.f32 -1.442695, %v5961_v18  ;;  %v4622_v23 = vmul.f32 -1.442695, %v5963_v21  ;;  %v5967_v24 = vpop.f32.mrb[2].mxu0  ;;  %v5969_v25 = vpop.f32.mrb[2].mxu1 }
 0x18e   : > { %5057 = vpow2.f32 %v4619_v8  ;;  %v4623_v26 = vmul.f32 -1.442695, %v5967_v24  ;;  %v5972_v27 = vpop.f32.mrb[3].mxu0  ;;  %v5974_v28 = vpop.f32.mrb[3].mxu1  ;;  %v4625_v29 = vmul.f32 -1.442695, %v5969_v25 }
 0x18f   : > { %5059 = vpow2.f32 %v4621_v13  ;;  %v4624_v30 = vmul.f32 -1.442695, %v5972_v27  ;;  %v4626_v31 = vmul.f32 -1.442695, %v5974_v28 }
 0x190   : > { %5061 = vpow2.f32 %v4620_v22 }
 0x191   : > { %5063 = vpow2.f32 %v4622_v23 }
 0x192   : > { %5065 = vpow2.f32 %v4623_v26 }
 0x193   : > { %5067 = vpow2.f32 %v4625_v29  ;;  %v5979_v32 = vpop.f32.mrb[4].mxu0  ;;  %v5981_v33 = vpop.f32.mrb[4].mxu1 }
 0x194   : > { %5069 = vpow2.f32 %v4624_v30  ;;  %v4627_v34 = vmul.f32 -1.442695, %v5979_v32  ;;  %v4629_v35 = vmul.f32 -1.442695, %v5981_v33  ;;  %v5985_v36 = vpop.f32.mrb[5].mxu0  ;;  %v5987_v37 = vpop.f32.mrb[5].mxu1 }
 0x195   : > { %5071 = vpow2.f32 %v4626_v31  ;;  %v4628_v38 = vmul.f32 -1.442695, %v5985_v36  ;;  %v4630_v39 = vmul.f32 -1.442695, %v5987_v37  ;;  %v5991_v40 = vpop.f32.mrb[6].mxu0  ;;  %v5993_v41 = vpop.f32.mrb[6].mxu1 }
 0x196   : > { %6551 = vst [vmem:[#allocation14_spill] sm:$0xff] %v5993_v41  ;;  %5073 = vpow2.f32 %v4627_v34  ;;  %v4631_v42 = vmul.f32 -1.442695, %v5991_v40  ;;  %v5996_v43 = vpop.f32.mrb[7].mxu0  ;;  %v5998_v44 = vpop.f32.mrb[7].mxu1 }
 0x197   : > { %6552 = vst [vmem:[#allocation15_spill] sm:$0xff] %v5996_v43  ;;  %6553 = vst [vmem:[#allocation16_spill] sm:$0xff] %v5998_v44  ;;  %5075 = vpow2.f32 %v4629_v35  ;;  %v4633_v8 = vmul.f32 -1.442695, %v5993_v41  ;;  %v4632_v26 = vmul.f32 -1.442695, %v5996_v43 }
 0x198   : > { %v5058_v45 = vpop.eup %5057  ;;  %5077 = vpow2.f32 %v4628_v38  ;;  %v4634_v34 = vmul.f32 -1.442695, %v5998_v44 }
 0x199   : > { %v5060_v46 = vpop.eup %5059  ;;  %v3624_v47 = vadd.f32 1.0, %v5058_v45  ;;  %5079 = vpow2.f32 %v4630_v39 }
 0x19a   : > { %v5062_v49 = vpop.eup %5061  ;;  %v3626_v50 = vadd.f32 1.0, %v5060_v46  ;;  %5081 = vpow2.f32 %v4631_v42 }
 0x19b   : > { %v5064_v51 = vpop.eup %5063  ;;  %5083 = vrcp.f32 %v3624_v47  ;;  %v3625_v52 = vadd.f32 1.0, %v5062_v49  ;;  %v6000_v53 = vpop.f32.mrb[8].mxu0 }
 0x19c   : > { %6554 = vst [vmem:[#allocation17_spill] sm:$0xff] %v6000_v53  ;;  %v6002_v54 = vpop.f32.mrb[8].mxu1  ;;  %v5066_v55 = vpop.eup %5065  ;;  %5085 = vrcp.f32 %v3626_v50  ;;  %v3627_v56 = vadd.f32 1.0, %v5064_v51  ;;  %v4635_v42 = vmul.f32 -1.442695, %v6000_v53 }
 0x19d   : > { %6555 = vst [vmem:[#allocation18_spill] sm:$0xff] %v6002_v54  ;;  %v6004_v57 = vpop.f32.mrb[9].mxu0  ;;  %v5068_v58 = vpop.eup %5067  ;;  %5087 = vrcp.f32 %v3625_v52  ;;  %v3628_v59 = vadd.f32 1.0, %v5066_v55  ;;  %v4637_v47 = vmul.f32 -1.442695, %v6002_v54 }
 0x19e   : > { %6556 = vst [vmem:[#allocation19_spill] sm:$0xff] %v6004_v57  ;;  %v6006_v60 = vpop.f32.mrb[9].mxu1  ;;  %v6008_v61 = vpop.f32.mrb[10].mxu0  ;;  %5089 = vrcp.f32 %v3627_v56  ;;  %v3630_v63 = vadd.f32 1.0, %v5068_v58  ;;  %v4636_v50 = vmul.f32 -1.442695, %v6004_v57 }
 0x19f   : > { %6557 = vst [vmem:[#allocation20_spill] sm:$0xff] %v6006_v60  ;;  %6558 = vst [vmem:[#allocation21_spill] sm:$0xff] %v6008_v61  ;;  %v5070_v62 = vpop.eup %5069  ;;  %v6010_v0 = vpop.f32.mrb[10].mxu1  ;;  %5091 = vrcp.f32 %v3628_v59  ;;  %v4638_v52 = vmul.f32 -1.442695, %v6006_v60 }
 0x1a0   : > { %6559 = vst [vmem:[#allocation22_spill] sm:$0xff] %v6010_v0  ;;  %v5072_v1 = vpop.eup %5071  ;;  %v3629_v2 = vadd.f32 1.0, %v5070_v62  ;;  %v6012_v4 = vpop.f32.mrb[11].mxu0  ;;  %5093 = vrcp.f32 %v3630_v63  ;;  %v4639_v56 = vmul.f32 -1.442695, %v6008_v61 }
 0x1a1   : > { %6560 = vst [vmem:[#allocation23_spill] sm:$0xff] %v6012_v4  ;;  %v6014_v5 = vpop.f32.mrb[11].mxu1  ;;  %v5074_v6 = vpop.eup %5073  ;;  %v3631_v7 = vadd.f32 1.0, %v5072_v1  ;;  %v4641_v63 = vmul.f32 -1.442695, %v6010_v0 }
 0x1a2   : > { %6561 = vst [vmem:[#allocation24_spill] sm:$0xff] %v6014_v5  ;;  %v5076_v9 = vpop.eup %5075  ;;  %5095 = vrcp.f32 %v3629_v2  ;;  %v3632_v10 = vadd.f32 1.0, %v5074_v6 }
 0x1a3   : > { %v5078_v11 = vpop.eup %5077  ;;  %5097 = vrcp.f32 %v3631_v7  ;;  %v3634_v12 = vadd.f32 1.0, %v5076_v9  ;;  %v6016_v16 = vpop.f32.mrb[12].mxu0  ;;  %v4640_v7 = vmul.f32 -1.442695, %v6012_v4 }
 0x1a4   : > { %v5080_v14 = vpop.eup %5079  ;;  %5099 = vrcp.f32 %v3632_v10  ;;  %v3633_v15 = vadd.f32 1.0, %v5078_v11  ;;  %6562 = vst [vmem:[#allocation25_spill] sm:$0xff] %v6016_v16  ;;  %v6018_v17 = vpop.f32.mrb[12].mxu1 }
 0x1a5   : > { %6563 = vst [vmem:[#allocation26_spill] sm:$0xff] %v6018_v17  ;;  %v5082_v19 = vpop.eup %5081  ;;  %5101 = vrcp.f32 %v3634_v12  ;;  %v3635_v20 = vadd.f32 1.0, %v5080_v14  ;;  %v6021_v13 = vpop.f32.mrb[13].mxu0  ;;  %v4642_v12 = vmul.f32 -1.442695, %v6014_v5 }
 0x1a6   : > { %v6023_v22 = vpop.eup %5083  ;;  %5103 = vrcp.f32 %v3633_v15  ;;  %v3636_v23 = vadd.f32 1.0, %v5082_v19  ;;  %v6026_v29 = vpop.f32.mrb[13].mxu1 }
 0x1a7   : > { %v6028_v30 = vpop.f32.mrb[14].mxu0  ;;  %v6030_v31 = vpop.eup %5085  ;;  %5105 = vrcp.f32 %v3635_v20  ;;  %v4643_v20 = vmul.f32 -1.442695, %v6016_v16 }
 0x1a8   : > { %v6033_v35 = vpop.f32.mrb[14].mxu1  ;;  %v6035_v38 = vpop.f32.mrb[15].mxu0  ;;  %5107 = vrcp.f32 %v3636_v23  ;;  %v4645_v23 = vmul.f32 -1.442695, %v6018_v17 }
 0x1a9   : > { %v6037_v39 = vpop.eup %5087  ;;  %v6040_v45 = vpop.f32.mrb[15].mxu1  ;;  %5109 = vpow2.f32 %v4633_v8 }
 0x1aa   : > { %v6042_v46 = vpop.eup %5089  ;;  %5111 = vpow2.f32 %v4632_v26 }
 0x1ab   : > { %v6045_v49 = vpop.eup %5091  ;;  %5113 = vpow2.f32 %v4634_v34  ;;  %v6054_v58 = vpop.f32.mrb[16].mxu0 }
 0x1ac   : > { %v6048_v51 = vpop.eup %5093  ;;  %5115 = vpow2.f32 %v4635_v42  ;;  %v6056_v59 = vpop.f32.mrb[16].mxu1 }
 0x1ad   : > { %v6051_v55 = vpop.eup %5095  ;;  %5117 = vpow2.f32 %v4637_v47  ;;  %v6061_v1 = vpop.f32.mrb[17].mxu0 }
 0x1ae   : > { %v6058_v62 = vpop.eup %5097  ;;  %6564 = vst [vmem:[#allocation27_spill] sm:$0xff] %v6061_v1  ;;  %v6063_v2 = vpop.f32.mrb[17].mxu1  ;;  %5119 = vpow2.f32 %v4636_v50 }
 0x1af   : > { %6565 = vst [vmem:[#allocation28_spill] sm:$0xff] %v6063_v2  ;;  %v6065_v6 = vpop.eup %5099  ;;  %v6068_v9 = vpop.f32.mrb[18].mxu0  ;;  %5121 = vpow2.f32 %v4638_v52 }
 0x1b0   : > { %6566 = vst [vmem:[#allocation29_spill] sm:$0xff] %v6068_v9  ;;  %v6070_v10 = vpop.f32.mrb[18].mxu1  ;;  %v6072_v11 = vpop.eup %5101  ;;  %5123 = vpow2.f32 %v4639_v56 }
 0x1b1   : > { %6567 = vst [vmem:[#allocation30_spill] sm:$0xff] %v6070_v10  ;;  %v6075_v14 = vpop.f32.mrb[19].mxu0  ;;  %v6077_v15 = vpop.f32.mrb[19].mxu1  ;;  %5125 = vpow2.f32 %v4641_v63 }
 0x1b2   : > { %6568 = vst [vmem:[#allocation31_spill] sm:$0xff] %v6075_v14  ;;  %6569 = vst [vmem:[#allocation32_spill] sm:$0xff] %v6077_v15  ;;  %v6079_v19 = vpop.eup %5103  ;;  %5127 = vpow2.f32 %v4640_v7 }
 0x1b3   : > { %v6082_v8 = vpop.eup %5105  ;;  %5129 = vpow2.f32 %v4642_v12  ;;  %v6087_v50 = vpop.f32.mrb[20].mxu0 }
 0x1b4   : > { %v6085_v26 = vpop.eup %5107  ;;  %5131 = vpow2.f32 %v4643_v20  ;;  %6570 = vst [vmem:[#allocation33_spill] sm:$0xff] %v6087_v50  ;;  %v6089_v52 = vpop.f32.mrb[20].mxu1 }
 0x1b5   : > { %v5110_v34 = vpop.eup %5109  ;;  %6571 = vst [vmem:[#allocation34_spill] sm:$0xff] %v6089_v52  ;;  %5133 = vpow2.f32 %v4645_v23  ;;  %v6091_v16 = vpop.f32.mrb[21].mxu0 }
 0x1b6   : > { %v5112_v42 = vpop.eup %5111  ;;  %v3638_v47 = vadd.f32 1.0, %v5110_v34  ;;  %6572 = vst [vmem:[#allocation35_spill] sm:$0xff] %v6091_v16  ;;  %v6093_v4 = vpop.f32.mrb[21].mxu1 }
 0x1b7   : > { %v5114_v56 = vpop.eup %5113  ;;  %v3637_v5 = vadd.f32 1.0, %v5112_v42  ;;  %6573 = vst [vmem:[#allocation36_spill] sm:$0xff] %v6093_v4  ;;  %v6095_v7 = vpop.f32.mrb[22].mxu0 }
 0x1b8   : > { %v5116_v63 = vpop.eup %5115  ;;  %5135 = vrcp.f32 %v3638_v47  ;;  %v3639_v17 = vadd.f32 1.0, %v5114_v56  ;;  %6574 = vst [vmem:[#allocation37_spill] sm:$0xff] %v6095_v7  ;;  %v6097_v20 = vpop.f32.mrb[22].mxu1 }
 0x1b9   : > { %v5118_v12 = vpop.eup %5117  ;;  %5137 = vrcp.f32 %v3637_v5  ;;  %v3640_v34 = vadd.f32 1.0, %v5116_v63  ;;  %6575 = vst [vmem:[#allocation38_spill] sm:$0xff] %v6097_v20  ;;  %v6099_v60 = vpop.f32.mrb[23].mxu0 }
 0x1ba   : > { %v5120_v0 = vpop.eup %5119  ;;  %5139 = vrcp.f32 %v3639_v17  ;;  %v3642_v61 = vadd.f32 1.0, %v5118_v12  ;;  %6576 = vst [vmem:[#allocation39_spill] sm:$0xff] %v6099_v60  ;;  %v6101_v23 = vpop.f32.mrb[23].mxu1 }
 0x1bb   : > { %6577 = vst [vmem:[#allocation40_spill] sm:$0xff] %v6101_v23  ;;  %v5122_v42 = vpop.eup %5121  ;;  %5141 = vrcp.f32 %v3640_v34  ;;  %v3641_v47 = vadd.f32 1.0, %v5120_v0  ;;  %v6103_v44 = vpop.f32.mrb[24].mxu0 }
 0x1bc   : > { %v5124_v56 = vpop.eup %5123  ;;  %5143 = vrcp.f32 %v3642_v61  ;;  %v3643_v57 = vadd.f32 1.0, %v5122_v42  ;;  %6578 = vst [vmem:[#allocation41_spill] sm:$0xff] %v6103_v44  ;;  %v6105_v17 = vpop.f32.mrb[24].mxu1 }
 0x1bd   : > { %v5126_v54 = vpop.eup %5125  ;;  %5145 = vrcp.f32 %v3641_v47  ;;  %v3644_v53 = vadd.f32 1.0, %v5124_v56  ;;  %6579 = vst [vmem:[#allocation42_spill] sm:$0xff] %v6105_v17  ;;  %v6107_v41 = vpop.f32.mrb[25].mxu0 }
 0x1be   : > { %v5128_v5 = vpop.eup %5127  ;;  %5147 = vrcp.f32 %v3643_v57  ;;  %v3646_v63 = vadd.f32 1.0, %v5126_v54  ;;  %6580 = vst [vmem:[#allocation43_spill] sm:$0xff] %v6107_v41  ;;  %v6109_v61 = vpop.f32.mrb[25].mxu1  ;;  %v4644_v54 = vmul.f32 -1.442695, %v6021_v13 }
 0x1bf   : > { %v5130_v12 = vpop.eup %5129  ;;  %5149 = vrcp.f32 %v3644_v53  ;;  %v3645_v43 = vadd.f32 1.0, %v5128_v5  ;;  %v6111_v42 = vpop.f32.mrb[26].mxu0  ;;  %v4646_v5 = vmul.f32 -1.442695, %v6026_v29 }
 0x1c0   : > { %v5132_v34 = vpop.eup %5131  ;;  %5151 = vrcp.f32 %v3646_v63  ;;  %v3647_v0 = vadd.f32 1.0, %v5130_v12  ;;  %6581 = vst [vmem:[#allocation44_spill] sm:$0xff] %v6111_v42  ;;  %v6114_v56 = vpop.f32.mrb[26].mxu1 }
 0x1c1   : > { %v5134_v47 = vpop.eup %5133  ;;  %5153 = vrcp.f32 %v3645_v43  ;;  %v3648_v57 = vadd.f32 1.0, %v5132_v34  ;;  %6582 = vst [vmem:[#allocation45_spill] sm:$0xff] %v6114_v56  ;;  %v6119_v41 = vpop.f32.mrb[27].mxu0  ;;  %v4647_v43 = vmul.f32 -1.442695, %v6028_v30  ;;  %v6130_v56 = vmul.f32 %v6023_v22, %v5955_v48 }
 0x1c2   : > { %v6116_v17 = vpop.eup %5135  ;;  %5155 = vrcp.f32 %v3647_v0  ;;  %v3650_v53 = vadd.f32 1.0, %v5134_v47  ;;  %6583 = vst [vmem:[#allocation46_spill] sm:$0xff] %v6119_v41  ;;  %v6121_v63 = vpop.f32.mrb[27].mxu1  ;;  %v4649_v0 = vmul.f32 -1.442695, %v6033_v35  ;;  %v6137_v41 = vmul.f32 %v6030_v31, %v5957_v3 }
 0x1c3   : > { %6584 = vst [vmem:[#allocation47_spill] sm:$0xff] %v6121_v63  ;;  %v6123_v12 = vpop.eup %5137  ;;  %5157 = vrcp.f32 %v3648_v57  ;;  %v6141_v57 = vmul.f32 %v6037_v39, %v5961_v18  ;;  %v4648_v63 = vmul.f32 -1.442695, %v6035_v38  ;;  %v6148_v48 = vmul.f32 %v6042_v46, %v5963_v21  ;;  %v6155_v31 = vpop.f32.mrb[28].mxu0 }
 0x1c4   : > { %v6126_v34 = vpop.eup %5139  ;;  %5159 = vrcp.f32 %v3650_v53  ;;  %v6152_v22 = vmul.f32 %v6045_v49, %v5967_v24  ;;  %v4650_v3 = vmul.f32 -1.442695, %v6040_v45  ;;  %6585 = vst [vmem:[#allocation48_spill] sm:$0xff] %v6155_v31  ;;  %v6157_v18 = vpop.f32.mrb[28].mxu1  ;;  %v6167_v21 = vmul.f32 %v6051_v55, %v5972_v27 }
 0x1c5   : > { %v6133_v47 = vpop.eup %5141  ;;  %5161 = vpow2.f32 %v4644_v54  ;;  %6586 = vst [vmem:[#allocation49_spill] sm:$0xff] %v6157_v18  ;;  %v6163_v54 = vmul.f32 %v6048_v51, %v5969_v25  ;;  %v4651_v24 = vmul.f32 -1.442695, %v6054_v58  ;;  %v6170_v46 = vpop.f32.mrb[29].mxu0  ;;  %v4653_v25 = vmul.f32 -1.442695, %v6056_v59 }
 0x1c6   : > { %v6144_v42 = vpop.eup %5143  ;;  %5163 = vpow2.f32 %v4646_v5  ;;  %6587 = vst [vmem:[#allocation50_spill] sm:$0xff] %v6170_v46  ;;  %v6172_v49 = vpop.f32.mrb[29].mxu1  ;;  %v6178_v5 = vmul.f32 %v6058_v62, %v5974_v28  ;;  %v4652_v51 = vmul.f32 -1.442695, %v6061_v1  ;;  %v4654_v28 = vmul.f32 -1.442695, %v6063_v2 }
 0x1c7   : > { %v6159_v39 = vpop.eup %5145  ;;  %5165 = vpow2.f32 %v4647_v43  ;;  %6588 = vst [vmem:[#allocation51_spill] sm:$0xff] %v6172_v49  ;;  %v6182_v27 = vpop.f32.mrb[30].mxu0  ;;  %v6190_v49 = vmul.f32 %v6065_v6, %v5979_v32  ;;  %v4655_v62 = vmul.f32 -1.442695, %v6068_v9  ;;  %v4657_v32 = vmul.f32 -1.442695, %v6070_v10 }
 0x1c8   : > { %v6174_v53 = vpop.eup %5147  ;;  %5167 = vpow2.f32 %v4649_v0  ;;  %6589 = vst [vmem:[#allocation52_spill] sm:$0xff] %v6182_v27  ;;  %v6184_v55 = vpop.f32.mrb[30].mxu1  ;;  %v4656_v6 = vmul.f32 -1.442695, %v6075_v14  ;;  %v6210_v27 = vmul.f32 %v6079_v19, %v5985_v36  ;;  %v6229_v36 = vmul.f32 -1.442695, %v6091_v16 }
 0x1c9   : > { %6590 = vst [vmem:[#allocation53_spill] sm:$0xff] %v6184_v55  ;;  %v6186_v43 = vpop.eup %5149  ;;  %5169 = vpow2.f32 %v4648_v63  ;;  %v6194_v0 = vpop.f32.mrb[31].mxu0  ;;  %v6202_v55 = vmul.f32 %v6072_v11, %v5981_v33  ;;  %v6223_v11 = vmul.f32 -1.442695, %v6087_v50  ;;  %v6249_v16 = vmul.f32 -1.442695, %v6099_v60 }
 0x1ca   : > { %6591 = vst [vmem:[#allocation54_spill] sm:$0xff] %v6194_v0  ;;  %v6196_v46 = vpop.f32.mrb[31].mxu1  ;;  %v6198_v18 = vpop.eup %5151  ;;  %5171 = vpow2.f32 %v4650_v3  ;;  %v6217_v0 = vmul.f32 -1.442695, %v6077_v15  ;;  %v6226_v3 = vmul.f32 -1.442695, %v6089_v52  ;;  %v6246_v52 = vmul.f32 %v6085_v26, %v5991_v40 }
 0x1cb   : > { %6592 = vst [vmem:[#allocation55_spill] sm:$0xff] %v6196_v46  ;;  %v6206_v63 = vpop.eup %5153  ;;  %v6214_v46 = vmul.f32 %v6082_v8, %v5987_v37  ;;  %5173 = vpow2.f32 %v4651_v24  ;;  %v6234_v37 = vmul.f32 -1.442695, %v6093_v4  ;;  %v6237_v8 = vmul.f32 -1.442695, %v6095_v7  ;;  %v1485_v4 = vpop.f32.mrb[32].mxu0 }
 0x1cc   : > { %v6220_v33 = vpop.eup %5155  ;;  %5175 = vpow2.f32 %v4653_v25  ;;  %v6240_v24 = vmul.f32 -1.442695, %v6097_v20  ;;  %v1598_v50 = vpop.f32.mrb[32].mxu1  ;;  %v6255_v20 = vmul.f32 -1.442695, %v6103_v44  ;;  %v3880_v31 = vmul.f32 %v6130_v56, %v1485_v4 }
 0x1cd   : > { %v6231_v19 = vpop.eup %5157  ;;  %5177 = vpow2.f32 %v4652_v51  ;;  %v6252_v51 = vmul.f32 -1.442695, %v6101_v23  ;;  %v3882_v15 = vmul.f32 %v6137_v41, %v1598_v50  ;;  %v1487_v40 = vpop.f32.mrb[33].mxu0 }
 0x1ce   : > { %v6242_v25 = vpop.eup %5159  ;;  %5179 = vpow2.f32 %v4654_v28  ;;  %v1600_v26 = vpop.f32.mrb[33].mxu1  ;;  %v3881_v60 = vmul.f32 %v6141_v57, %v1487_v40 }
 0x1cf   : > { %v5162_v7 = vpop.eup %5161  ;;  %5181 = vpow2.f32 %v4655_v62  ;;  %v3883_v23 = vmul.f32 %v6148_v48, %v1600_v26  ;;  %v1489_v10 = vpop.f32.mrb[34].mxu0 }
 0x1d0   : > { %v5164_v28 = vpop.eup %5163  ;;  %v3649_v14 = vadd.f32 1.0, %v5162_v7  ;;  %5183 = vpow2.f32 %v4657_v32  ;;  %v1602_v9 = vpop.f32.mrb[34].mxu1  ;;  %v3884_v44 = vmul.f32 %v6152_v22, %v1489_v10  ;;  %v4722_v32 = vpack.c.bf16 %v3881_v60, %v3880_v31  ;;  %v6594_v22 = vld [vmem:[#allocation42_spill] sm:$0xff] }
 0x1d1   : > { %v5166_v2 = vpop.eup %5165  ;;  %v3651_v62 = vadd.f32 1.0, %v5164_v28  ;;  %5185 = vpow2.f32 %v4656_v6  ;;  %v3886_v4 = vmul.f32 %v6163_v54, %v1602_v9  ;;  %v1491_v56 = vpop.f32.mrb[35].mxu0  ;;  %v4723_v1 = vpack.c.bf16 %v3883_v23, %v3882_v15  ;;  %v6593_v28 = vld [vmem:[#allocation14_spill] sm:$0xff] }
 0x1d2   : > { %v1604_v41 = vpop.f32.mrb[35].mxu1  ;;  %v5168_v50 = vpop.eup %5167  ;;  %5187 = vrcp.f32 %v3649_v14  ;;  %v3652_v7 = vadd.f32 1.0, %v5166_v2  ;;  %v3885_v40 = vmul.f32 %v6167_v21, %v1491_v56  ;;  %v3830_v10 = vmul.f32 %v6116_v17, %v6593_v28  ;;  %4136 = vst [vmem:[%s6272_s4] sm:$0xff] %v4722_v32  ;;  %v6595_v17 = vld [vmem:[#allocation15_spill] sm:$0xff]  ;;  %v6596_v21 = vld [vmem:[#allocation16_spill] sm:$0xff] }
 0x1d3   : > { %v5170_v57 = vpop.eup %5169  ;;  %5189 = vrcp.f32 %v3651_v62  ;;  %v3654_v48 = vadd.f32 1.0, %v5168_v50  ;;  %v3887_v26 = vmul.f32 %v6178_v5, %v1604_v41  ;;  %v6268_v54 = vmul.f32 -1.442695, %v6594_v22  ;;  %4137 = vst [vmem:[%s6272_s4 + $0x8] sm:$0xff] %v4723_v1  ;;  %v1495_v56 = vpop.f32.mrb[36].mxu0 }
 0x1d4   : > { %v5172_v6 = vpop.eup %5171  ;;  %5191 = vrcp.f32 %v3652_v7  ;;  %v3653_v9 = vadd.f32 1.0, %v5170_v57  ;;  %v4724_v14 = vpack.c.bf16 %v3885_v40, %v3884_v44  ;;  %v3829_v31 = vmul.f32 %v6123_v12, %v6595_v17  ;;  %v1608_v41 = vpop.f32.mrb[36].mxu1 }
 0x1d5   : > { %v5174_v60 = vpop.eup %5173  ;;  %5193 = vrcp.f32 %v3654_v48  ;;  %v3655_v2 = vadd.f32 1.0, %v5172_v6  ;;  %v4725_v15 = vpack.c.bf16 %v3887_v26, %v3886_v4  ;;  %v3831_v5 = vmul.f32 %v6126_v34, %v6596_v21  ;;  %v1497_v4 = vpop.f32.mrb[37].mxu0 }
 0x1d6   : > { %v5176_v23 = vpop.eup %5175  ;;  %5195 = vrcp.f32 %v3653_v9  ;;  %v3656_v62 = vadd.f32 1.0, %v5174_v60  ;;  %4138 = vst [vmem:[%s6272_s4 + $0x10] sm:$0xff] %v4724_v14  ;;  %v3888_v7 = vmul.f32 %v6190_v49, %v1495_v56  ;;  %v3890_v44 = vmul.f32 %v6202_v55, %v1608_v41  ;;  %v1610_v32 = vpop.f32.mrb[37].mxu1  ;;  %v6597_v56 = vld [vmem:[#allocation17_spill] sm:$0xff] }
 0x1d7   : > { %v5178_v50 = vpop.eup %5177  ;;  %5197 = vrcp.f32 %v3655_v2  ;;  %v3658_v1 = vadd.f32 1.0, %v5176_v23  ;;  %4139 = vst [vmem:[%s6272_s4 + $0x18] sm:$0xff] %v4725_v15  ;;  %v3889_v34 = vmul.f32 %v6210_v27, %v1497_v4  ;;  %v3891_v48 = vmul.f32 %v6214_v46, %v1610_v32  ;;  %v1499_v40 = vpop.f32.mrb[38].mxu0  ;;  %v6600_v32 = vld [vmem:[#allocation19_spill] sm:$0xff] }
 0x1d8   : > { %v5180_v57 = vpop.eup %5179  ;;  %5199 = vrcp.f32 %v3656_v62  ;;  %v3657_v12 = vadd.f32 1.0, %v5178_v50  ;;  %v1612_v26 = vpop.f32.mrb[38].mxu1  ;;  %v3892_v9 = vmul.f32 %v6246_v52, %v1499_v40  ;;  %v3832_v41 = vmul.f32 %v6133_v47, %v6597_v56 }
 0x1d9   : > { %v5182_v6 = vpop.eup %5181  ;;  %5201 = vrcp.f32 %v3658_v1  ;;  %v3659_v28 = vadd.f32 1.0, %v5180_v57  ;;  %v3894_v60 = vmul.f32 %v3830_v10, %v1612_v26  ;;  %v1501_v49 = vpop.f32.mrb[39].mxu0  ;;  %v4726_v15 = vpack.c.bf16 %v3889_v34, %v3888_v7  ;;  %v6598_v10 = vld [vmem:[#allocation43_spill] sm:$0xff]  ;;  %v6599_v7 = vld [vmem:[#allocation18_spill] sm:$0xff]  ;;  %v6601_v57 = vld [vmem:[#allocation20_spill] sm:$0xff] }
 0x1da   : > { %v1614_v2 = vpop.f32.mrb[39].mxu1  ;;  %v5184_v55 = vpop.eup %5183  ;;  %5203 = vrcp.f32 %v3657_v12  ;;  %v3660_v14 = vadd.f32 1.0, %v5182_v6  ;;  %v4727_v23 = vpack.c.bf16 %v3891_v48, %v3890_v44  ;;  %v3893_v17 = vmul.f32 %v3829_v31, %v1501_v49  ;;  %v6602_v34 = vld [vmem:[#allocation21_spill] sm:$0xff] }
 0x1db   : > { %v5186_v27 = vpop.eup %5185  ;;  %5205 = vrcp.f32 %v3659_v28  ;;  %v3662_v46 = vadd.f32 1.0, %v5184_v55  ;;  %v3895_v21 = vmul.f32 %v3831_v5, %v1614_v2  ;;  %v6290_v50 = vmul.f32 -1.442695, %v6598_v10  ;;  %4140 = vst [vmem:[%s6272_s4 + $0x20] sm:$0xff] %v4726_v15  ;;  %v1505_v40 = vpop.f32.mrb[40].mxu0  ;;  %v6603_v28 = vld [vmem:[#allocation22_spill] sm:$0xff] }
 0x1dc   : > { %v5188_v62 = vpop.eup %5187  ;;  %5207 = vrcp.f32 %v3660_v14  ;;  %v3661_v52 = vadd.f32 1.0, %v5186_v27  ;;  %4141 = vst [vmem:[%s6272_s4 + $0x28] sm:$0xff] %v4727_v23  ;;  %v3834_v44 = vmul.f32 %v6144_v42, %v6599_v7  ;;  %v4728_v31 = vpack.c.bf16 %v3893_v17, %v3892_v9  ;;  %v1618_v26 = vpop.f32.mrb[40].mxu1 }
 0x1dd   : > { %v5190_v1 = vpop.eup %5189  ;;  %5209 = vrcp.f32 %v3662_v46  ;;  %v4729_v5 = vpack.c.bf16 %v3895_v21, %v3894_v60  ;;  %v3833_v47 = vmul.f32 %v6159_v39, %v6600_v32  ;;  %v3835_v12 = vmul.f32 %v6174_v53, %v6601_v57  ;;  %v1507_v39 = vpop.f32.mrb[41].mxu0  ;;  %v6604_v53 = vld [vmem:[#allocation23_spill] sm:$0xff]  ;;  %v6607_v32 = vld [vmem:[#allocation26_spill] sm:$0xff] }
 0x1de   : > { %v5192_v4 = vpop.eup %5191  ;;  %v3836_v48 = vmul.f32 %v6186_v43, %v6602_v34  ;;  %5211 = vrcp.f32 %v3661_v52  ;;  %v3838_v42 = vmul.f32 %v6198_v18, %v6603_v28  ;;  %4142 = vst [vmem:[%s6272_s4 + $0x30] sm:$0xff] %v4728_v31  ;;  %v3896_v9 = vmul.f32 %v3832_v41, %v1505_v40  ;;  %v1620_v49 = vpop.f32.mrb[41].mxu1  ;;  %v6605_v18 = vld [vmem:[#allocation24_spill] sm:$0xff] }
 0x1df   : > { %v5194_v6 = vpop.eup %5193  ;;  %5213 = vpow2.f32 %v6217_v0  ;;  %4143 = vst [vmem:[%s6272_s4 + $0x38] sm:$0xff] %v4729_v5  ;;  %v3898_v60 = vmul.f32 %v3834_v44, %v1618_v26  ;;  %v3837_v55 = vmul.f32 %v6206_v63, %v6604_v53  ;;  %v3897_v43 = vmul.f32 %v3833_v47, %v1507_v39  ;;  %v1509_v15 = vpop.f32.mrb[42].mxu0  ;;  %v6606_v44 = vld [vmem:[#allocation25_spill] sm:$0xff] }
 0x1e0   : > { %v5196_v2 = vpop.eup %5195  ;;  %5215 = vpow2.f32 %v6223_v11  ;;  %v3899_v14 = vmul.f32 %v3835_v12, %v1620_v49  ;;  %v1622_v23 = vpop.f32.mrb[42].mxu1  ;;  %v3839_v0 = vmul.f32 %v6220_v33, %v6605_v18  ;;  %v3900_v46 = vmul.f32 %v3836_v48, %v1509_v15  ;;  %v6610_v18 = vld [vmem:[#allocation29_spill] sm:$0xff] }
 0x1e1   : > { %v5198_v27 = vpop.eup %5197  ;;  %5217 = vpow2.f32 %v6226_v3  ;;  %v3902_v17 = vmul.f32 %v3838_v42, %v1622_v23  ;;  %v1511_v21 = vpop.f32.mrb[43].mxu0  ;;  %v4670_v63 = vmul.f32 -1.442695, %v6109_v61  ;;  %v4730_v11 = vpack.c.bf16 %v3897_v43, %v3896_v9  ;;  %v6608_v9 = vld [vmem:[#allocation27_spill] sm:$0xff] }
 0x1e2   : > { %v1624_v56 = vpop.f32.mrb[43].mxu1  ;;  %v5200_v41 = vpop.eup %5199  ;;  %5219 = vpow2.f32 %v6229_v36  ;;  %v4731_v52 = vpack.c.bf16 %v3899_v14, %v3898_v60  ;;  %v3840_v31 = vmul.f32 %v6231_v19, %v6606_v44  ;;  %v3901_v33 = vmul.f32 %v3837_v55, %v1511_v21 }
 0x1e3   : > { %v5202_v7 = vpop.eup %5201  ;;  %5221 = vpow2.f32 %v6234_v37  ;;  %v3903_v3 = vmul.f32 %v3839_v0, %v1624_v56  ;;  %v3842_v47 = vmul.f32 %v6242_v25, %v6607_v32  ;;  %v3841_v57 = vmul.f32 %v5188_v62, %v6021_v13  ;;  %4144 = vst [vmem:[%s6272_s4 + $0x40] sm:$0xff] %v4730_v11  ;;  %v1628_v62 = vpop.f32.mrb[44].mxu1 }
 0x1e4   : > { %v5204_v5 = vpop.eup %5203  ;;  %v3843_v36 = vmul.f32 %v5190_v1, %v6026_v29  ;;  %5223 = vpow2.f32 %v6237_v8  ;;  %4145 = vst [vmem:[%s6272_s4 + $0x48] sm:$0xff] %v4731_v52  ;;  %v3844_v19 = vmul.f32 %v5192_v4, %v6028_v30  ;;  %v4732_v37 = vpack.c.bf16 %v3901_v33, %v3900_v46  ;;  %v1515_v8 = vpop.f32.mrb[44].mxu0  ;;  %v6612_v52 = vld [vmem:[#allocation31_spill] sm:$0xff] }
 0x1e5   : > { %v5206_v12 = vpop.eup %5205  ;;  %5225 = vpow2.f32 %v6240_v24  ;;  %v4733_v34 = vpack.c.bf16 %v3903_v3, %v3902_v17  ;;  %v3846_v25 = vmul.f32 %v5194_v6, %v6033_v35  ;;  %v3845_v13 = vmul.f32 %v5196_v2, %v6035_v38  ;;  %v1517_v4 = vpop.f32.mrb[45].mxu0 }
 0x1e6   : > { %v5208_v48 = vpop.eup %5207  ;;  %v3847_v29 = vmul.f32 %v5198_v27, %v6040_v45  ;;  %5227 = vpow2.f32 %v6249_v16  ;;  %v3848_v40 = vmul.f32 %v5200_v41, %v6054_v58  ;;  %4146 = vst [vmem:[%s6272_s4 + $0x50] sm:$0xff] %v4732_v37  ;;  %v3904_v30 = vmul.f32 %v3840_v31, %v1515_v8  ;;  %v1630_v26 = vpop.f32.mrb[45].mxu1  ;;  %v6609_v27 = vld [vmem:[#allocation28_spill] sm:$0xff] }
 0x1e7   : > { %v5210_v1 = vpop.eup %5209  ;;  %5229 = vpow2.f32 %v6252_v51  ;;  %4147 = vst [vmem:[%s6272_s4 + $0x58] sm:$0xff] %v4733_v34  ;;  %v3906_v24 = vmul.f32 %v3842_v47, %v1628_v62  ;;  %v3850_v38 = vmul.f32 %v5202_v7, %v6056_v59  ;;  %v3905_v45 = vmul.f32 %v3841_v57, %v1517_v4  ;;  %v1519_v6 = vpop.f32.mrb[46].mxu0 }
 0x1e8   : > { %v5212_v35 = vpop.eup %5211  ;;  %5231 = vpow2.f32 %v6255_v20  ;;  %v3907_v16 = vmul.f32 %v3843_v36, %v1630_v26  ;;  %v1632_v28 = vpop.f32.mrb[46].mxu1  ;;  %v3849_v58 = vmul.f32 %v5204_v5, %v6608_v9  ;;  %v3908_v51 = vmul.f32 %v3844_v19, %v1519_v6 }
 0x1e9   : > { %v5214_v42 = vpop.eup %5213  ;;  %5233 = vpow2.f32 %v6268_v54  ;;  %v3910_v60 = vmul.f32 %v3846_v25, %v1632_v28  ;;  %v1521_v39 = vpop.f32.mrb[47].mxu0  ;;  %v4734_v59 = vpack.c.bf16 %v3905_v45, %v3904_v30  ;;  %v3851_v54 = vmul.f32 %v5206_v12, %v6609_v27  ;;  %v6613_v28 = vld [vmem:[#allocation44_spill] sm:$0xff] }
 0x1ea   : > { %v1634_v49 = vpop.f32.mrb[47].mxu1  ;;  %v5216_v2 = vpop.eup %5215  ;;  %v3663_v53 = vadd.f32 1.0, %v5214_v42  ;;  %5235 = vpow2.f32 %v6290_v50  ;;  %v4735_v20 = vpack.c.bf16 %v3907_v16, %v3906_v24  ;;  %v3909_v14 = vmul.f32 %v3845_v13, %v1521_v39 }
 0x1eb   : > { %v5218_v55 = vpop.eup %5217  ;;  %v3664_v43 = vadd.f32 1.0, %v5216_v2  ;;  %5237 = vpow2.f32 %v4670_v63  ;;  %v3911_v15 = vmul.f32 %v3847_v29, %v1634_v49  ;;  %v3852_v0 = vmul.f32 %v5208_v48, %v6610_v18  ;;  %4148 = vst [vmem:[%s6272_s4 + $0x60] sm:$0xff] %v4734_v59  ;;  %v6611_v63 = vld [vmem:[#allocation30_spill] sm:$0xff]  ;;  %v1525_v31 = vpop.f32.mrb[48].mxu0 }
 0x1ec   : > { %v5220_v23 = vpop.eup %5219  ;;  %5239 = vrcp.f32 %v3663_v53  ;;  %v3666_v46 = vadd.f32 1.0, %v5218_v55  ;;  %4149 = vst [vmem:[%s6272_s4 + $0x68] sm:$0xff] %v4735_v20  ;;  %v4736_v21 = vpack.c.bf16 %v3909_v14, %v3908_v51  ;;  %v3854_v11 = vmul.f32 %v5210_v1, %v6611_v63  ;;  %v1638_v33 = vpop.f32.mrb[48].mxu1  ;;  %v6614_v51 = vld [vmem:[#allocation45_spill] sm:$0xff]  ;;  %v6615_v53 = vld [vmem:[#allocation46_spill] sm:$0xff]  ;;  %v6616_v14 = vld [vmem:[#allocation32_spill] sm:$0xff] }
 0x1ed   : > { %v5222_v17 = vpop.eup %5221  ;;  %5241 = vrcp.f32 %v3664_v43  ;;  %v3665_v50 = vadd.f32 1.0, %v5220_v23  ;;  %v4737_v56 = vpack.c.bf16 %v3911_v15, %v3910_v60  ;;  %v3853_v7 = vmul.f32 %v5212_v35, %v6612_v52  ;;  %v1527_v57 = vpop.f32.mrb[49].mxu0  ;;  %v6617_v23 = vld [vmem:[#allocation47_spill] sm:$0xff]  ;;  %v6621_v63 = vld [vmem:[#allocation50_spill] sm:$0xff] }
 0x1ee   : > { %v5224_v41 = vpop.eup %5223  ;;  %5243 = vrcp.f32 %v3666_v46  ;;  %v3667_v44 = vadd.f32 1.0, %v5222_v17  ;;  %4150 = vst [vmem:[%s6272_s4 + $0x70] sm:$0xff] %v4736_v21  ;;  %v3912_v32 = vmul.f32 %v3848_v40, %v1525_v31  ;;  %v3914_v47 = vmul.f32 %v3850_v38, %v1638_v33  ;;  %v1640_v36 = vpop.f32.mrb[49].mxu1  ;;  %v6622_v31 = vld [vmem:[#allocation34_spill] sm:$0xff] }
 0x1ef   : > { %v5226_v3 = vpop.eup %5225  ;;  %5245 = vrcp.f32 %v3665_v50  ;;  %v3668_v5 = vadd.f32 1.0, %v5224_v41  ;;  %4151 = vst [vmem:[%s6272_s4 + $0x78] sm:$0xff] %v4737_v56  ;;  %v3913_v37 = vmul.f32 %v3849_v58, %v1527_v57  ;;  %v3915_v34 = vmul.f32 %v3851_v54, %v1640_v36  ;;  %v1529_v48 = vpop.f32.mrb[50].mxu0  ;;  %v6618_v54 = vld [vmem:[#allocation48_spill] sm:$0xff]  ;;  %v6619_v50 = vld [vmem:[#allocation33_spill] sm:$0xff] }
 0x1f0   : > { %v5228_v12 = vpop.eup %5227  ;;  %5247 = vrcp.f32 %v3667_v44  ;;  %v3670_v19 = vadd.f32 1.0, %v5226_v3  ;;  %v1642_v25 = vpop.f32.mrb[50].mxu1  ;;  %v3916_v8 = vmul.f32 %v3852_v0, %v1529_v48  ;;  %v4671_v42 = vmul.f32 -1.442695, %v6613_v28  ;;  %v6620_v56 = vld [vmem:[#allocation49_spill] sm:$0xff]  ;;  %v6623_v3 = vld [vmem:[#allocation51_spill] sm:$0xff] }
 0x1f1   : > { %v5230_v13 = vpop.eup %5229  ;;  %5249 = vrcp.f32 %v3668_v5  ;;  %v3669_v29 = vadd.f32 1.0, %v5228_v12  ;;  %v6348_v62 = vmul.f32 %v3854_v11, %v1642_v25  ;;  %v1531_v1 = vpop.f32.mrb[51].mxu0  ;;  %v4738_v4 = vpack.c.bf16 %v3913_v37, %v3912_v32  ;;  %v6624_v12 = vld [vmem:[#allocation35_spill] sm:$0xff]  ;;  %v6625_v37 = vld [vmem:[#allocation52_spill] sm:$0xff] }
 0x1f2   : > { %v1644_v40 = vpop.f32.mrb[51].mxu1  ;;  %v5232_v30 = vpop.eup %5231  ;;  %5251 = vrcp.f32 %v3670_v19  ;;  %v3671_v24 = vadd.f32 1.0, %v5230_v13  ;;  %v4739_v26 = vpack.c.bf16 %v3915_v34, %v3914_v47  ;;  %v3917_v45 = vmul.f32 %v3853_v7, %v1531_v1  ;;  %v6626_v13 = vld [vmem:[#allocation36_spill] sm:$0xff] }
 0x1f3   : > { %v5234_v35 = vpop.eup %5233  ;;  %5253 = vrcp.f32 %v3669_v29  ;;  %v3672_v38 = vadd.f32 1.0, %v5232_v30  ;;  %4152 = vst [vmem:[%s6272_s4 + $0x80] sm:$0xff] %v4738_v4  ;;  %v4673_v60 = vmul.f32 -1.442695, %v6614_v51  ;;  %v4672_v59 = vmul.f32 -1.442695, %v6615_v53 }
 0x1f4   : > { %v5236_v16 = vpop.eup %5235  ;;  %5255 = vrcp.f32 %v3671_v24  ;;  %v3674_v6 = vadd.f32 1.0, %v5234_v35  ;;  %4153 = vst [vmem:[%s6272_s4 + $0x88] sm:$0xff] %v4739_v26  ;;  %v4740_v39 = vpack.c.bf16 %v3917_v45, %v3916_v8  ;;  %v1535_v20 = vpop.f32.mrb[52].mxu0  ;;  %v4674_v27 = vmul.f32 -1.442695, %v6617_v23  ;;  %v6627_v24 = vld [vmem:[#allocation37_spill] sm:$0xff] }
 0x1f5   : > { %v5238_v9 = vpop.eup %5237  ;;  %5257 = vrcp.f32 %v3672_v38  ;;  %v3673_v58 = vadd.f32 1.0, %v5236_v16  ;;  %v1648_v55 = vpop.f32.mrb[52].mxu1  ;;  %v4675_v18 = vmul.f32 -1.442695, %v6618_v54  ;;  %v4677_v41 = vmul.f32 -1.442695, %v6620_v56 }
 0x1f6   : > { %v5240_v49 = vpop.eup %5239  ;;  %5259 = vrcp.f32 %v3674_v6  ;;  %v3675_v2 = vadd.f32 1.0, %v5238_v9  ;;  %4154 = vst [vmem:[%s6272_s4 + $0x90] sm:$0xff] %v4740_v39  ;;  %v1537_v0 = vpop.f32.mrb[53].mxu0  ;;  %v4676_v11 = vmul.f32 -1.442695, %v6621_v63  ;;  %v6628_v4 = vld [vmem:[#allocation53_spill] sm:$0xff] }
 0x1f7   : > { %v5242_v43 = vpop.eup %5241  ;;  %v3855_v15 = vmul.f32 %v5240_v49, %v6616_v14  ;;  %5261 = vrcp.f32 %v3673_v58  ;;  %v1650_v46 = vpop.f32.mrb[53].mxu1  ;;  %v4678_v5 = vmul.f32 -1.442695, %v6623_v3  ;;  %v4679_v34 = vmul.f32 -1.442695, %v6625_v37  ;;  %v6629_v45 = vld [vmem:[#allocation38_spill] sm:$0xff] }
 0x1f8   : > { %v5244_v17 = vpop.eup %5243  ;;  %v3856_v21 = vmul.f32 %v5242_v43, %v6619_v50  ;;  %5263 = vrcp.f32 %v3675_v2  ;;  %v1539_v52 = vpop.f32.mrb[54].mxu0  ;;  %v4681_v26 = vmul.f32 -1.442695, %v6628_v4  ;;  %v6630_v6 = vld [vmem:[#allocation54_spill] sm:$0xff]  ;;  %v6634_v50 = vld [vmem:[#allocation55_spill] sm:$0xff] }
 0x1f9   : > { %v1652_v7 = vpop.f32.mrb[54].mxu1  ;;  %v5246_v44 = vpop.eup %5245  ;;  %v3858_v33 = vmul.f32 %v5244_v17, %v6622_v31  ;;  %5265 = vpow2.f32 %v4671_v42  ;;  %v3919_v32 = vmul.f32 %v3855_v15, %v1644_v40  ;;  %v4680_v42 = vmul.f32 -1.442695, %v6630_v6 }
 0x1fa   : > { %v1541_v47 = vpop.f32.mrb[55].mxu0  ;;  %v1654_v57 = vpop.f32.mrb[55].mxu1  ;;  %v3857_v19 = vmul.f32 %v5246_v44, %v6624_v12  ;;  %5267 = vpow2.f32 %v4673_v60  ;;  %v3920_v48 = vmul.f32 %v3856_v21, %v1535_v20  ;;  %v6631_v60 = vld [vmem:[#allocation39_spill] sm:$0xff]  ;;  %v4682_v21 = vmul.f32 -1.442695, %v6634_v50 }
 0x1fb   : > { %v5248_v36 = vpop.eup %5247  ;;  %5269 = vpow2.f32 %v4672_v59  ;;  %v4741_v8 = vpack.c.bf16 %v3919_v32, %v6348_v62  ;;  %v3922_v1 = vmul.f32 %v3858_v33, %v1648_v55  ;;  %v1545_v2 = vpop.f32.mrb[56].mxu0  ;;  %v6632_v55 = vld [vmem:[#allocation40_spill] sm:$0xff] }
 0x1fc   : > { %v5250_v25 = vpop.eup %5249  ;;  %v3859_v29 = vmul.f32 %v5248_v36, %v6626_v13  ;;  %5271 = vpow2.f32 %v4674_v27  ;;  %v3921_v35 = vmul.f32 %v3857_v19, %v1537_v0  ;;  %v1658_v59 = vpop.f32.mrb[56].mxu1 }
 0x1fd   : > { %v5252_v30 = vpop.eup %5251  ;;  %v3860_v40 = vmul.f32 %v5250_v25, %v6627_v24  ;;  %5273 = vpow2.f32 %v4675_v18  ;;  %4155 = vst [vmem:[%s6272_s4 + $0x98] sm:$0xff] %v4741_v8  ;;  %v1547_v27 = vpop.f32.mrb[57].mxu0 }
 0x1fe   : > { %v5254_v38 = vpop.eup %5253  ;;  %v3862_v16 = vmul.f32 %v5252_v30, %v6629_v45  ;;  %v3923_v9 = vmul.f32 %v3859_v29, %v1650_v46  ;;  %5275 = vpow2.f32 %v4677_v41  ;;  %v4742_v62 = vpack.c.bf16 %v3921_v35, %v3920_v48  ;;  %v1660_v18 = vpop.f32.mrb[57].mxu1  ;;  %v6633_v46 = vld [vmem:[#allocation41_spill] sm:$0xff] }
 0x1ff   : > { %v5256_v58 = vpop.eup %5255  ;;  %v3861_v39 = vmul.f32 %v5254_v38, %v6631_v60  ;;  %v3924_v49 = vmul.f32 %v3860_v40, %v1539_v52  ;;  %5277 = vpow2.f32 %v4676_v11  ;;  %v6378_v52 = vpop.f32.mrb[58].mxu0 }
 0x200   : > { %v5258_v20 = vpop.eup %5257  ;;  %v3863_v43 = vmul.f32 %v5256_v58, %v6632_v55  ;;  %v4743_v14 = vpack.c.bf16 %v3923_v9, %v3922_v1  ;;  %v3926_v15 = vmul.f32 %v3862_v16, %v1652_v7  ;;  %5279 = vpow2.f32 %v4678_v5  ;;  %4156 = vst [vmem:[%s6272_s4 + $0xa0] sm:$0xff] %v4742_v62  ;;  %v6380_v44 = vpop.f32.mrb[58].mxu1 }
 0x201   : > { %v5260_v0 = vpop.eup %5259  ;;  %v3864_v17 = vmul.f32 %v5258_v20, %v6633_v46  ;;  %v3925_v41 = vmul.f32 %v3861_v39, %v1541_v47  ;;  %5281 = vpow2.f32 %v4679_v34  ;;  %v6384_v33 = vpop.f32.mrb[59].mxu0 }
 0x202   : > { %v5262_v31 = vpop.eup %5261  ;;  %v3866_v11 = vmul.f32 %v5260_v0, %v6594_v22  ;;  %4157 = vst [vmem:[%s6272_s4 + $0xa8] sm:$0xff] %v4743_v14  ;;  %v3927_v7 = vmul.f32 %v3863_v43, %v1654_v57  ;;  %v6386_v32 = vpop.f32.mrb[59].mxu1  ;;  %5283 = vpow2.f32 %v4681_v26 }
 0x203   : > { %v5264_v5 = vpop.eup %5263  ;;  %v3865_v36 = vmul.f32 %v5262_v31, %v6598_v10  ;;  %v4744_v47 = vpack.c.bf16 %v3925_v41, %v3924_v49  ;;  %v3928_v12 = vmul.f32 %v3864_v17, %v1545_v2  ;;  %5285 = vpow2.f32 %v4680_v42  ;;  %v1555_v40 = vpop.f32.mrb[60].mxu0 }
 0x204   : > { %v5266_v19 = vpop.eup %5265  ;;  %v3867_v48 = vmul.f32 %v5264_v5, %v6109_v61  ;;  %v4745_v22 = vpack.c.bf16 %v3927_v7, %v3926_v15  ;;  %v3930_v34 = vmul.f32 %v3866_v11, %v1658_v59  ;;  %5287 = vpow2.f32 %v4682_v21  ;;  %v1668_v26 = vpop.f32.mrb[60].mxu1 }
 0x205   : > { %v5268_v25 = vpop.eup %5267  ;;  %v3676_v57 = vadd.f32 1.0, %v5266_v19  ;;  %4158 = vst [vmem:[%s6272_s4 + $0xb0] sm:$0xff] %v4744_v47  ;;  %v3929_v13 = vmul.f32 %v3865_v36, %v1547_v27  ;;  %v1557_v45 = vpop.f32.mrb[61].mxu0 }
 0x206   : > { %v5270_v29 = vpop.eup %5269  ;;  %v3678_v8 = vadd.f32 1.0, %v5268_v25  ;;  %4159 = vst [vmem:[%s6272_s4 + $0xb8] sm:$0xff] %v4745_v22  ;;  %v3931_v1 = vmul.f32 %v3867_v48, %v1660_v18  ;;  %v6392_v16 = vpop.f32.mrb[61].mxu1 }
 0x207   : > { %v5272_v10 = vpop.eup %5271  ;;  %5289 = vrcp.f32 %v3676_v57  ;;  %v3677_v30 = vadd.f32 1.0, %v5270_v29  ;;  %v4746_v24 = vpack.c.bf16 %v3929_v13, %v3928_v12  ;;  %v6395_v58 = vpop.f32.mrb[62].mxu0 }
 0x208   : > { %v5274_v61 = vpop.eup %5273  ;;  %5291 = vrcp.f32 %v3678_v8  ;;  %v3679_v35 = vadd.f32 1.0, %v5272_v10  ;;  %v4747_v38 = vpack.c.bf16 %v3931_v1, %v3930_v34  ;;  %v6397_v60 = vpop.f32.mrb[62].mxu1 }
 0x209   : > { %v5276_v42 = vpop.eup %5275  ;;  %5293 = vrcp.f32 %v3677_v30  ;;  %v3680_v9 = vadd.f32 1.0, %v5274_v61  ;;  %4160 = vst [vmem:[%s6272_s4 + $0xc0] sm:$0xff] %v4746_v24  ;;  %v6400_v49 = vpop.f32.mrb[63].mxu0 }
 0x20a   : > { %v5278_v39 = vpop.eup %5277  ;;  %5295 = vrcp.f32 %v3679_v35  ;;  %v3682_v62 = vadd.f32 1.0, %v5276_v42  ;;  %4161 = vst [vmem:[%s6272_s4 + $0xc8] sm:$0xff] %v4747_v38  ;;  %v6402_v2 = vpop.f32.mrb[63].mxu1 }
 0x20b   : > { %v5280_v59 = vpop.eup %5279  ;;  %5297 = vrcp.f32 %v3680_v9  ;;  %v3681_v20 = vadd.f32 1.0, %v5278_v39 }
 0x20c   : > { %v5282_v55 = vpop.eup %5281  ;;  %5299 = vrcp.f32 %v3682_v62  ;;  %v3683_v43 = vadd.f32 1.0, %v5280_v59 }
 0x20d   : > { %v5284_v14 = vpop.eup %5283  ;;  %5301 = vrcp.f32 %v3681_v20  ;;  %v3684_v15 = vadd.f32 1.0, %v5282_v55 }
 0x20e   : > { %v5286_v27 = vpop.eup %5285  ;;  %5303 = vrcp.f32 %v3683_v43  ;;  %v3686_v18 = vadd.f32 1.0, %v5284_v14 }
 0x20f   : > { %v5288_v0 = vpop.eup %5287  ;;  %5305 = vrcp.f32 %v3684_v15  ;;  %v3685_v46 = vadd.f32 1.0, %v5286_v27 }
 0x210   : > { %5307 = vrcp.f32 %v3686_v18  ;;  %v3687_v17 = vadd.f32 1.0, %v5288_v0 }
 0x211   : > { %v5290_v21 = vpop.eup %5289  ;;  %5309 = vrcp.f32 %v3685_v46 }
 0x212   : > { %v5292_v41 = vpop.eup %5291  ;;  %v3868_v31 = vmul.f32 %v5290_v21, %v6613_v28  ;;  %5311 = vrcp.f32 %v3687_v17 }
 0x213   : > { %v5294_v11 = vpop.eup %5293  ;;  %v3870_v7 = vmul.f32 %v5292_v41, %v6614_v51 }
 0x214   : > { %v5296_v5 = vpop.eup %5295  ;;  %v3869_v36 = vmul.f32 %v5294_v11, %v6615_v53  ;;  %v3932_v47 = vmul.f32 %v3868_v31, %v6378_v52 }
 0x215   : > { %v5298_v12 = vpop.eup %5297  ;;  %v3871_v19 = vmul.f32 %v5296_v5, %v6617_v23  ;;  %v3934_v48 = vmul.f32 %v3870_v7, %v6380_v44 }
 0x216   : > { %v5300_v22 = vpop.eup %5299  ;;  %v3872_v34 = vmul.f32 %v5298_v12, %v6618_v54  ;;  %v3933_v28 = vmul.f32 %v3869_v36, %v6384_v33 }
 0x217   : > { %v5302_v25 = vpop.eup %5301  ;;  %v3874_v57 = vmul.f32 %v5300_v22, %v6620_v56  ;;  %v3935_v51 = vmul.f32 %v3871_v19, %v6386_v32 }
 0x218   : > { %v5304_v53 = vpop.eup %5303  ;;  %v3873_v52 = vmul.f32 %v5302_v25, %v6621_v63  ;;  %v4748_v13 = vpack.c.bf16 %v3933_v28, %v3932_v47  ;;  %v3936_v29 = vmul.f32 %v3872_v34, %v1555_v40 }
 0x219   : > { %v5306_v23 = vpop.eup %5305  ;;  %v3875_v44 = vmul.f32 %v5304_v53, %v6623_v3  ;;  %v4749_v8 = vpack.c.bf16 %v3935_v51, %v3934_v48  ;;  %v3938_v1 = vmul.f32 %v3874_v57, %v1668_v26 }
 0x21a   : > { %v5308_v54 = vpop.eup %5307  ;;  %v3876_v33 = vmul.f32 %v5306_v23, %v6625_v37  ;;  %4162 = vst [vmem:[%s6272_s4 + $0xd0] sm:$0xff] %v4748_v13  ;;  %v3937_v56 = vmul.f32 %v3873_v52, %v1557_v45 }
 0x21b   : > { %v5310_v32 = vpop.eup %5309  ;;  %v3878_v10 = vmul.f32 %v5308_v54, %v6628_v4  ;;  %4163 = vst [vmem:[%s6272_s4 + $0xd8] sm:$0xff] %v4749_v8  ;;  %v3939_v63 = vmul.f32 %v3875_v44, %v6392_v16 }
 0x21c   : > { %v5312_v30 = vpop.eup %5311  ;;  %v3877_v24 = vmul.f32 %v5310_v32, %v6630_v6  ;;  %v4750_v3 = vpack.c.bf16 %v3937_v56, %v3936_v29  ;;  %v3940_v40 = vmul.f32 %v3876_v33, %v6395_v58 }
 0x21d   : > { %v3879_v37 = vmul.f32 %v5312_v30, %v6634_v50  ;;  %v4751_v26 = vpack.c.bf16 %v3939_v63, %v3938_v1  ;;  %v3942_v61 = vmul.f32 %v3878_v10, %v6397_v60 }
 0x21e   : > { %4164 = vst [vmem:[%s6272_s4 + $0xe0] sm:$0xff] %v4750_v3  ;;  %v3941_v4 = vmul.f32 %v3877_v24, %v6400_v49 }
 0x21f   : > { %4165 = vst [vmem:[%s6272_s4 + $0xe8] sm:$0xff] %v4751_v26  ;;  %v3943_v6 = vmul.f32 %v3879_v37, %v6402_v2 }
 0x220   : > { %v4752_v35 = vpack.c.bf16 %v3941_v4, %v3940_v40 }
 0x221   : > { %v4753_v50 = vpack.c.bf16 %v3943_v6, %v3942_v61 }
 0x222   : > { %4166 = vst [vmem:[%s6272_s4 + $0xf0] sm:$0xff] %v4752_v35 }
 0x223   : > { %4167 = vst [vmem:[%s6272_s4 + $0xf8] sm:$0xff] %v4753_v50 }
 0x224   : > { %5414 = shalt.err (!%p5411_p11)
}
 0x225   : > { %s5415_s19 = scalar_lea.hbm %s6434_s30, 4096  ;;  %s5419_s21 = scalar_lea.hbm %s6490_s3, 8192 }
 0x226   : > { %p5416_p9 = scmp.ne.s32.totalorder %s6434_s30, %s5415_s19  ;;  %p5420_p8 = scmp.lt.u32.totalorder %s6434_s30, %s6490_s3 }
 0x227   : > { %p5421_p2 = scmp.lt.u32.totalorder %s5419_s21, %s5415_s19  ;;  %p5423_p1 = scmp.lt.u32.totalorder %s5415_s19, %s6434_s30 }
 0x228   : > { %p5417_p10 = pnand %p5416_p9, %p6635_p7 }
 0x229   : > { %p5422_p13 = por %p5421_p2, %p5420_p8 }
 0x22a   : > { %p5418_p5 = pneg %p5417_p10 }
 0x22b   : > { %p5424_p12 = por %p5423_p1, %p5422_p13 }
 0x22d   : > { %p5425_p0 = pnand %p5424_p12, %p5418_p5 }
 0x22f   : > { %5428 = shalt.err (!%p5425_p0)
}
 0x230   : > { %s5498_s4 = smov 256   ;;  %s5499_s6 = smov 512  }
 0x231   : > { %s5500_s5 = smov 16  }
 0x232   : > { %4763 = dma.vmem_to_hbm [thread:$0]  (%p6635_p7), %s6436_s7, 4096, %s6434_s30, %s4169_s15, %s5498_s4, %s5499_s6, %s5500_s5  }
 0x233 PF: > { %s4200_s27 = sand.u32 1, %s5467_s12   ;;  %p6636_p3 = scmp.ne.s32.totalorder %s6541_s25, 0 }
 0x234   : > { %p6637_p4 = scmp.ge.s32.totalorder %s5487_s17, 2  ;;  %s4201_s8 = scalar_lea.sflag [#allocation6], %s4200_s27 }
 0x236   : > { %p4777_p6 = pnand %p6637_p4, %p6636_p3 }
 0x238   : > { %5462 = dma.done.wait (!%p4777_p6), %s4201_s8, 4096  }
 0x239   : > { %5464 = vsyncadd (!%p4777_p6), %s4201_s8, 4294963200  ;;  %s20_s17 = sadd.s32 1, %s5487_s17   ;;  %s6638_s12 = smov %s5471_s13 }
 0x23a   : > { %p17_p11 = scmp.ge.s32.totalorder %s20_s17, 4   ;;  %s6639_s13 = smov %s5475_s14 }
 0x23b   : > { %s6640_s14 = smov %s5569_s24  ;;  %s6641_s15 = smov %s5483_s16 }
 0x23c   : > { %s6642_s16 = smov %s6644_s18  ;;  %19 = sbr.rel (!%p17_p11) target bundleno = 7 (0x7), region = 106 }
 0x243   :  { %4206 = vsyncpa [#allocation5], 1 }
 0x244   :  { %4208 = vsyncpa [#allocation5 + $0x1], 1 }
 0x245   :  { %4209 = vsyncpa [#allocation8], 1 }
 0x246   :  { %4211 = vsyncpa [#allocation8 + $0x1], 1 }
 0x247   :  { %4212 = vsyncpa [#allocation6], 1 }
 0x248   :  { %4214 = vsyncpa [#allocation6 + $0x1], 1 }

</bundles_post_ra>
